<compile_context>
chip_gen: v5e
topology: v5e:2x2
jax: 0.10.0
libtpu: 0.0.40
codegen_flags: <defaults>
</compile_context>

<pallas_src>
import functools
import math

import numpy as np

import jax
import jax.numpy as jnp
from jax import lax
from jax.experimental import pallas as pl
from jax.experimental.pallas import tpu as pltpu

NPAD = 128  # lane-dense padding for fused conv channels and classifier output


def _round_up(x, m):
    return (x + m - 1) // m * m


# ----------------------------------------------------------------------------
# Fused kernel: one grid step == TB batch items
# ----------------------------------------------------------------------------
def _fused_cnn_kernel(tok_ref, table_ref, wf_ref, bf_ref, mask_ref, pw_ref,
                      pb_ref, out_ref, emb_s, *, L, Lp, E, TB, GB, max_fw):
    """Refs:
      tok_ref  [TB*Lp, 1]       i32   one (batch, position) token id per row; -1 = pad
      table_ref[Vp, E]          bf16  vocab-padded embedding table
      wf_ref   [max_fw*E, NPAD] bf16  fused (all widths) conv weight
      bf_ref   [1, NPAD]        f32   fused conv bias
      mask_ref [L, NPAD]        f32   {0,1} per-(time, fused-channel) validity mask
      pw_ref   [NPAD, NPAD]     bf16  classifier weight (zero-row/col padded)
      pb_ref   [1, NPAD]        f32   classifier bias
      out_ref  [TB, NPAD]       f32   logits (lanes >= n_label are zero padding)
      emb_s    [TB, Lp, E]      f32   VMEM scratch holding gathered embeddings
    """
    Vp = table_ref.shape[0]
    NP = out_ref.shape[1]

    # ---- embedding gather: one-hot @ table on the MXU, GB batch items/chunk ----
    # Rows for positions >= L (and padded batch rows) carry the sentinel id -1,
    # which never matches the vocab iota -> all-zero one-hot row -> exact zero
    # embedding, so the scratch needs no separate zero-init / pl.when gating.
    table = table_ref[...]                                        # [Vp, E] bf16
    rows = GB * Lp
    for g in range(TB // GB):                     # tiny static unroll (<= 4)
        tok = tok_ref[pl.ds(g * rows, rows), :]                   # [rows, 1] i32
        oh = (tok == lax.broadcasted_iota(jnp.int32, (rows, Vp), 1)
              ).astype(jnp.bfloat16)                              # [rows, Vp]
        emb = jnp.dot(oh, table,
                      preferred_element_type=jnp.float32)         # [rows, E] f32
        emb_s[pl.ds(g * GB, GB), :, :] = emb.reshape(GB, Lp, E)

    # ---- all filter widths as ONE im2col matmul (M=TB*L, N=NPAD lanes) --------
    sh = [emb_s[:, pl.ds(i, L), :].reshape(TB * L, E).astype(jnp.bfloat16)
          for i in range(max_fw)]
    im2col = jnp.concatenate(sh, axis=1)          # [TB*L, max_fw*E] bf16
    acts = jnp.dot(im2col, wf_ref[...],
                   preferred_element_type=jnp.float32)            # [TB*L, NP]
    acts = jnp.maximum(acts + bf_ref[...], 0.0)   # bias + ReLU (f32 epilogue)

    # ---- masked max-over-time --------------------------------------------------
    # mask==0 entries become exact zeros, which is safe because ReLU output >= 0;
    # if the activation ever changes, switch to a -inf fill before the max.
    acts = acts.reshape(TB, L, NP) * mask_ref[...][None, :, :]
    pooled = jnp.max(acts, axis=1)                # [TB, NP]

    # ---- classifier head --------------------------------------------------------
    logits = jnp.dot(pooled.astype(jnp.bfloat16), pw_ref[...],
                     preferred_element_type=jnp.float32) + pb_ref[...]
    out_ref[...] = logits                         # lane-dense [TB, 128] store


# ----------------------------------------------------------------------------
# Wrapper: one-time weight prep + jitted tokens -> logits path
# ----------------------------------------------------------------------------
def _prepare_params(params):
    """One-time fuse/pad/cast of the model weights into kernel layout."""
    table = params["embedding"]                   # [V, E] f32
    convs = params["convs"]                       # [(fw, [fw*E, C], [1, C]), ...]
    pred_w, pred_b = params["pred_w"], params["pred_b"]

    V, E = table.shape
    C = convs[0][1].shape[1]
    filters = tuple(int(fw) for (fw, _, _) in convs)
    nf = len(filters)
    max_fw = max(filters)
    n_label = pred_w.shape[1]
    assert nf * C <= NPAD, "fused conv channels exceed the 128-lane pad"
    assert n_label <= NPAD

    # Vocab-padded bf16 embedding table (small-vocab VMEM path; see TODO below).
    Vp = _round_up(V, 128)
    table_pad = (jnp.zeros((Vp, E), jnp.float32).at[:V, :].set(table)
                 .astype(jnp.bfloat16))

    # Fused conv weight/bias: K zero-padded to max_fw*E, N lane-padded to NPAD.
    wf = jnp.zeros((max_fw * E, NPAD), jnp.float32)
    bf = jnp.zeros((1, NPAD), jnp.float32)
    for f, (fw, w, b) in enumerate(convs):
        wf = wf.at[: fw * E, f * C:(f + 1) * C].set(w)
        bf = bf.at[:, f * C:(f + 1) * C].set(b)
    wf = wf.astype(jnp.bfloat16)

    # Classifier head padded to [NPAD, NPAD]; the zero rows/cols are harmless
    # because the pooled pad lanes are exactly zero.
    pw_pad = (jnp.zeros((NPAD, NPAD), jnp.float32)
              .at[: nf * C, : n_label].set(pred_w).astype(jnp.bfloat16))
    pb_pad = jnp.zeros((1, NPAD), jnp.float32).at[:, : n_label].set(pred_b)

    return dict(table=table_pad, wf=wf, bf=bf, pw=pw_pad, pb=pb_pad,
                filters=filters, E=E, C=C, max_fw=max_fw, n_label=n_label)


def _forward(prep, tokens, batch_tile):
    B, L = tokens.shape
    E, C = prep["E"], prep["C"]
    filters, max_fw, n_label = prep["filters"], prep["max_fw"], prep["n_label"]
    assert L >= max_fw, "sequence shorter than the widest filter"

    TB = int(batch_tile)
    if B < TB:
        TB = _round_up(B, 8)
    B_pad = _round_up(B, TB)
    GB = math.gcd(TB, 4)               # gather chunk size (bounds vreg pressure)
    Lp = _round_up(L + max_fw - 1, 8)  # shift-padded, sublane-aligned length

    # Tokens: pad batch/positions with the -1 sentinel (-> zero embedding rows)
    # and present one (batch, position) id per sublane row.
    tok_pad = jnp.full((B_pad, Lp), -1, jnp.int32).at[:B, :L].set(
        tokens.astype(jnp.int32))
    tok_col = tok_pad.reshape(B_pad * Lp, 1)

    # Per-lane time-validity mask: filter f's channels are valid for
    # t < L - fw + 1; pad lanes (>= nf*C) are always invalid.
    thr = np.zeros((NPAD,), np.float32)
    for f, fw in enumerate(filters):
        thr[f * C:(f + 1) * C] = L - fw + 1
    mask = jnp.asarray((np.arange(L)[:, None] < thr[None, :]).astype(np.float32))

    kern = functools.partial(_fused_cnn_kernel, L=L, Lp=Lp, E=E, TB=TB, GB=GB,
                             max_fw=max_fw)

    grid_spec = pltpu.PrefetchScalarGridSpec(
        num_scalar_prefetch=0,
        grid=(B_pad // TB,),           # keep >= 2 steps so v7x can use both TCs
        in_specs=[
            pl.BlockSpec((TB * Lp, 1), lambda i: (i, 0)),        # tokens
            # Constant-index operands (table / weights / mask).  VMEM is ample
            # here; otherwise pipeline_mode=pl.Buffered(1) would halve them.
            pl.BlockSpec(prep["table"].shape, lambda i: (0, 0)),
            pl.BlockSpec(prep["wf"].shape, lambda i: (0, 0)),
            pl.BlockSpec(prep["bf"].shape, lambda i: (0, 0)),
            pl.BlockSpec(mask.shape, lambda i: (0, 0)),
            pl.BlockSpec(prep["pw"].shape, lambda i: (0, 0)),
            pl.BlockSpec(prep["pb"].shape, lambda i: (0, 0)),
        ],
        out_specs=pl.BlockSpec((TB, NPAD), lambda i: (i, 0)),
        scratch_shapes=[pltpu.VMEM((TB, Lp, E), jnp.float32)],
    )

    out = pl.pallas_call(
        kern,
        out_shape=jax.ShapeDtypeStruct((B_pad, NPAD), jnp.float32),
        grid_spec=grid_spec,
        compiler_params=pltpu.CompilerParams(
            dimension_semantics=("parallel",)),
    )(tok_col, prep["table"], prep["wf"], prep["bf"], mask,
      prep["pw"], prep["pb"])

    # TODO(synk): for realistic vocabularies (esp. v7x's 64 MiB VMEM) keep the
    # table in HBM (memory_space=pl.ANY) and gather rows with async DMA copies
    # instead of the VMEM-resident one-hot matmul; set vmem_limit_bytes and
    # re-derive TB against the remaining VMEM.
    return out[:B, :n_label]


def make_cnn_forward(params, *, batch_tile=16):
    """Prepare weights once and return a jitted tokens -> logits function."""
    prep = _prepare_params(params)

    @jax.jit
    def forward(tokens):
        return _forward(prep, tokens, batch_tile)

    return forward


def cnn_text_classifier_forward(params, tokens, *, batch_tile=16):
    """One-shot convenience wrapper (eval mode: dropouts are identity)."""
    return _forward(_prepare_params(params), tokens, batch_tile)


# ----------------------------------------------------------------------------
# Params + pure-JAX reference (mirrors the PyTorch module in eval mode)
# ----------------------------------------------------------------------------
def init_params(key, vocab_size, embedding_size, filters, filter_size, n_label):
    ks = jax.random.split(key, 3 + 2 * len(filters))
    params = {
        "embedding": jax.random.normal(ks[0], (vocab_size, embedding_size),
                                       jnp.float32) * 0.1,
        "convs": [],
        "pred_w": jax.random.normal(ks[1], (len(filters) * filter_size, n_label),
                                    jnp.float32) * 0.05,
        "pred_b": jax.random.normal(ks[2], (1, n_label), jnp.float32) * 0.05,
    }
    for idx, fw in enumerate(filters):
        wk, bk = ks[3 + 2 * idx], ks[4 + 2 * idx]
        # w[i*E + e, c] == torch Conv2d weight[c, 0, i, e]
        w = jax.random.normal(wk, (fw * embedding_size, filter_size),
                              jnp.float32) * 0.1
        b = jax.random.normal(bk, (1, filter_size), jnp.float32) * 0.1
        params["convs"].append((fw, w, b))
    return params


def ref_forward(params, tokens):
    emb = jnp.take(params["embedding"], tokens, axis=0)           # [B, L, E]
    B, L, E = emb.shape
    feats = []
    for (fw, w, bias) in params["convs"]:
        T = L - fw + 1
        wins = jnp.stack([emb[:, t:t + fw, :].reshape(B, fw * E)
                          for t in range(T)], axis=1)             # [B, T, fw*E]
        conv = jnp.einsum("btk,kc->btc", wins, w) + bias          # [B, T, C]
        feats.append(jnp.max(jax.nn.relu(conv), axis=1))          # [B, C]
    feats = jnp.concatenate(feats, axis=1)
    out = feats @ params["pred_w"] + params["pred_b"]
    return out.reshape(-1, params["pred_b"].shape[1])


# ----------------------------------------------------------------------------
if __name__ == "__main__":
    vocab_size = 50
    embedding_size = 32
    filters = (3, 4, 5)          # MODEL_session filters = '3,4,5'
    filter_size = 32
    n_label = 4
    B, L = 32, 16                # B=32 with TB=16 -> 2 grid steps (v7x: both TCs)

    key = jax.random.PRNGKey(0)
    pk, tk = jax.random.split(key)
    params = init_params(pk, vocab_size, embedding_size, filters,
                         filter_size, n_label)
    tokens = jax.random.randint(tk, (B, L), 0, vocab_size, dtype=jnp.int32)

    forward = make_cnn_forward(params, batch_tile=16)
    out = forward(tokens)
    jax.block_until_ready(out)
    assert out.shape == (B, n_label), out.shape

    ref = ref_forward(params, tokens)
    err = float(jnp.max(jnp.abs(out - ref)))
    assert err < 2e-2, f"kernel/reference mismatch: max|diff|={err}"
    print("KERNEL_OK")
</pallas_src>

<mosaic_0001>
module attributes {stable_mosaic.version = 11 : i64} {
  func.func @_fused_cnn_kernel(%arg0: i32, %arg1: memref<384x1xi32, #tpu.memory_space<vmem>>, %arg2: memref<128x32xbf16, #tpu.memory_space<vmem>>, %arg3: memref<160x128xbf16, #tpu.memory_space<vmem>>, %arg4: memref<1x128xf32, #tpu.memory_space<vmem>>, %arg5: memref<16x128xf32, #tpu.memory_space<vmem>>, %arg6: memref<128x128xbf16, #tpu.memory_space<vmem>>, %arg7: memref<1x128xf32, #tpu.memory_space<vmem>>, %arg8: memref<16x128xf32, #tpu.memory_space<vmem>>, %arg9: memref<16x24x32xf32, #tpu.memory_space<vmem>>) attributes {dimension_semantics = [#tpu.dimension_semantics<parallel>], iteration_bounds = array<i64: 2>, scalar_prefetch = 0 : i64, scratch_operands = 1 : i64, tpu.core_type = #tpu.core_type<tc>, window_params = [{transform_indices = @transform_0, window_bounds = array<i64: 384, 1>}, {pipeline_mode = #tpu.pipeline_mode<synchronous>, transform_indices = @transform_1, window_bounds = array<i64: 128, 32>}, {pipeline_mode = #tpu.pipeline_mode<synchronous>, transform_indices = @transform_2, window_bounds = array<i64: 160, 128>}, {pipeline_mode = #tpu.pipeline_mode<synchronous>, transform_indices = @transform_3, window_bounds = array<i64: 1, 128>}, {pipeline_mode = #tpu.pipeline_mode<synchronous>, transform_indices = @transform_4, window_bounds = array<i64: 16, 128>}, {pipeline_mode = #tpu.pipeline_mode<synchronous>, transform_indices = @transform_5, window_bounds = array<i64: 128, 128>}, {pipeline_mode = #tpu.pipeline_mode<synchronous>, transform_indices = @transform_6, window_bounds = array<i64: 1, 128>}, {transform_indices = @transform_7, window_bounds = array<i64: 16, 128>}]} {
    %c0 = arith.constant 0 : index
    %c0_0 = arith.constant 0 : index
    %0 = vector.load %arg2[%c0, %c0_0] : memref<128x32xbf16, #tpu.memory_space<vmem>>, vector<128x32xbf16>
    %c0_1 = arith.constant 0 : index
    %c0_2 = arith.constant 0 : index
    %1 = vector.load %arg1[%c0_1, %c0_2] : memref<384x1xi32, #tpu.memory_space<vmem>>, vector<96x1xi32>
    %2 = tpu.iota {dimensions = array<i32: 1>} : vector<96x128xi32>
    %3 = vector.broadcast %1 : vector<96x1xi32> to vector<96x128xi32>
    %4 = arith.cmpi eq, %3, %2 : vector<96x128xi32>
    %5 = arith.extui %4 : vector<96x128xi1> to vector<96x128xi32>
    %6 = arith.sitofp %5 : vector<96x128xi32> to vector<96x128xf32>
    %7 = arith.truncf %6 : vector<96x128xf32> to vector<96x128xbf16>
    %cst = arith.constant dense<0.000000e+00> : vector<96x32xf32>
    %8 = tpu.matmul %7, %0, %cst {dimension_numbers = #tpu.dot_dimension_numbers<[1], [0], [0], [1], [0, 0, 1, 1], [], []>} : vector<96x128xbf16>, vector<128x32xbf16>, vector<96x32xf32> -> vector<96x32xf32>
    %9 = vector.shape_cast %8 : vector<96x32xf32> to vector<4x24x32xf32>
    %c0_3 = arith.constant 0 : index
    %c0_4 = arith.constant 0 : index
    %c0_5 = arith.constant 0 : index
    %10 = vector.load %arg9[%c0_3, %c0_4, %c0_5] : memref<16x24x32xf32, #tpu.memory_space<vmem>>, vector<4x24x32xf32>
    tpu.vector_store %arg9[%c0_3, %c0_4, %c0_5], %9 {strides = array<i32>} : memref<16x24x32xf32, #tpu.memory_space<vmem>>, vector<4x24x32xf32>,
    %c96 = arith.constant 96 : index
    %c0_6 = arith.constant 0 : index
    %11 = vector.load %arg1[%c96, %c0_6] : memref<384x1xi32, #tpu.memory_space<vmem>>, vector<96x1xi32>
    %12 = tpu.iota {dimensions = array<i32: 1>} : vector<96x128xi32>
    %13 = vector.broadcast %11 : vector<96x1xi32> to vector<96x128xi32>
    %14 = arith.cmpi eq, %13, %12 : vector<96x128xi32>
    %15 = arith.extui %14 : vector<96x128xi1> to vector<96x128xi32>
    %16 = arith.sitofp %15 : vector<96x128xi32> to vector<96x128xf32>
    %17 = arith.truncf %16 : vector<96x128xf32> to vector<96x128xbf16>
    %cst_7 = arith.constant dense<0.000000e+00> : vector<96x32xf32>
    %18 = tpu.matmul %17, %0, %cst_7 {dimension_numbers = #tpu.dot_dimension_numbers<[1], [0], [0], [1], [0, 0, 1, 1], [], []>} : vector<96x128xbf16>, vector<128x32xbf16>, vector<96x32xf32> -> vector<96x32xf32>
    %19 = vector.shape_cast %18 : vector<96x32xf32> to vector<4x24x32xf32>
    %c4 = arith.constant 4 : index
    %c0_8 = arith.constant 0 : index
    %c0_9 = arith.constant 0 : index
    %20 = vector.load %arg9[%c4, %c0_8, %c0_9] : memref<16x24x32xf32, #tpu.memory_space<vmem>>, vector<4x24x32xf32>
    tpu.vector_store %arg9[%c4, %c0_8, %c0_9], %19 {strides = array<i32>} : memref<16x24x32xf32, #tpu.memory_space<vmem>>, vector<4x24x32xf32>,
    %c192 = arith.constant 192 : index
    %c0_10 = arith.constant 0 : index
    %21 = vector.load %arg1[%c192, %c0_10] : memref<384x1xi32, #tpu.memory_space<vmem>>, vector<96x1xi32>
    %22 = tpu.iota {dimensions = array<i32: 1>} : vector<96x128xi32>
    %23 = vector.broadcast %21 : vector<96x1xi32> to vector<96x128xi32>
    %24 = arith.cmpi eq, %23, %22 : vector<96x128xi32>
    %25 = arith.extui %24 : vector<96x128xi1> to vector<96x128xi32>
    %26 = arith.sitofp %25 : vector<96x128xi32> to vector<96x128xf32>
    %27 = arith.truncf %26 : vector<96x128xf32> to vector<96x128xbf16>
    %cst_11 = arith.constant dense<0.000000e+00> : vector<96x32xf32>
    %28 = tpu.matmul %27, %0, %cst_11 {dimension_numbers = #tpu.dot_dimension_numbers<[1], [0], [0], [1], [0, 0, 1, 1], [], []>} : vector<96x128xbf16>, vector<128x32xbf16>, vector<96x32xf32> -> vector<96x32xf32>
    %29 = vector.shape_cast %28 : vector<96x32xf32> to vector<4x24x32xf32>
    %c8 = arith.constant 8 : index
    %c0_12 = arith.constant 0 : index
    %c0_13 = arith.constant 0 : index
    %30 = vector.load %arg9[%c8, %c0_12, %c0_13] : memref<16x24x32xf32, #tpu.memory_space<vmem>>, vector<4x24x32xf32>
    tpu.vector_store %arg9[%c8, %c0_12, %c0_13], %29 {strides = array<i32>} : memref<16x24x32xf32, #tpu.memory_space<vmem>>, vector<4x24x32xf32>,
    %c288 = arith.constant 288 : index
    %c0_14 = arith.constant 0 : index
    %31 = vector.load %arg1[%c288, %c0_14] : memref<384x1xi32, #tpu.memory_space<vmem>>, vector<96x1xi32>
    %32 = tpu.iota {dimensions = array<i32: 1>} : vector<96x128xi32>
    %33 = vector.broadcast %31 : vector<96x1xi32> to vector<96x128xi32>
    %34 = arith.cmpi eq, %33, %32 : vector<96x128xi32>
    %35 = arith.extui %34 : vector<96x128xi1> to vector<96x128xi32>
    %36 = arith.sitofp %35 : vector<96x128xi32> to vector<96x128xf32>
    %37 = arith.truncf %36 : vector<96x128xf32> to vector<96x128xbf16>
    %cst_15 = arith.constant dense<0.000000e+00> : vector<96x32xf32>
    %38 = tpu.matmul %37, %0, %cst_15 {dimension_numbers = #tpu.dot_dimension_numbers<[1], [0], [0], [1], [0, 0, 1, 1], [], []>} : vector<96x128xbf16>, vector<128x32xbf16>, vector<96x32xf32> -> vector<96x32xf32>
    %39 = vector.shape_cast %38 : vector<96x32xf32> to vector<4x24x32xf32>
    %c12 = arith.constant 12 : index
    %c0_16 = arith.constant 0 : index
    %c0_17 = arith.constant 0 : index
    %40 = vector.load %arg9[%c12, %c0_16, %c0_17] : memref<16x24x32xf32, #tpu.memory_space<vmem>>, vector<4x24x32xf32>
    tpu.vector_store %arg9[%c12, %c0_16, %c0_17], %39 {strides = array<i32>} : memref<16x24x32xf32, #tpu.memory_space<vmem>>, vector<4x24x32xf32>,
    %c0_18 = arith.constant 0 : index
    %c0_19 = arith.constant 0 : index
    %c0_20 = arith.constant 0 : index
    %41 = vector.load %arg9[%c0_18, %c0_19, %c0_20] : memref<16x24x32xf32, #tpu.memory_space<vmem>>, vector<16x16x32xf32>
    %42 = vector.shape_cast %41 : vector<16x16x32xf32> to vector<256x32xf32>
    %43 = arith.truncf %42 : vector<256x32xf32> to vector<256x32xbf16>
    %c0_21 = arith.constant 0 : index
    %c1 = arith.constant 1 : index
    %c0_22 = arith.constant 0 : index
    %44 = vector.load %arg9[%c0_21, %c1, %c0_22] : memref<16x24x32xf32, #tpu.memory_space<vmem>>, vector<16x16x32xf32>
    %45 = vector.shape_cast %44 : vector<16x16x32xf32> to vector<256x32xf32>
    %46 = arith.truncf %45 : vector<256x32xf32> to vector<256x32xbf16>
    %c0_23 = arith.constant 0 : index
    %c2 = arith.constant 2 : index
    %c0_24 = arith.constant 0 : index
    %47 = vector.load %arg9[%c0_23, %c2, %c0_24] : memref<16x24x32xf32, #tpu.memory_space<vmem>>, vector<16x16x32xf32>
    %48 = vector.shape_cast %47 : vector<16x16x32xf32> to vector<256x32xf32>
    %49 = arith.truncf %48 : vector<256x32xf32> to vector<256x32xbf16>
    %c0_25 = arith.constant 0 : index
    %c3 = arith.constant 3 : index
    %c0_26 = arith.constant 0 : index
    %50 = vector.load %arg9[%c0_25, %c3, %c0_26] : memref<16x24x32xf32, #tpu.memory_space<vmem>>, vector<16x16x32xf32>
    %51 = vector.shape_cast %50 : vector<16x16x32xf32> to vector<256x32xf32>
    %52 = arith.truncf %51 : vector<256x32xf32> to vector<256x32xbf16>
    %c0_27 = arith.constant 0 : index
    %c4_28 = arith.constant 4 : index
    %c0_29 = arith.constant 0 : index
    %53 = vector.load %arg9[%c0_27, %c4_28, %c0_29] : memref<16x24x32xf32, #tpu.memory_space<vmem>>, vector<16x16x32xf32>
    %54 = vector.shape_cast %53 : vector<16x16x32xf32> to vector<256x32xf32>
    %55 = arith.truncf %54 : vector<256x32xf32> to vector<256x32xbf16>
    %56 = tpu.concatenate %43, %46, %49, %52, %55 in 1 : vector<256x32xbf16>, vector<256x32xbf16>, vector<256x32xbf16>, vector<256x32xbf16>, vector<256x32xbf16> -> vector<256x160xbf16>
    %c0_30 = arith.constant 0 : index
    %c0_31 = arith.constant 0 : index
    %57 = vector.load %arg3[%c0_30, %c0_31] : memref<160x128xbf16, #tpu.memory_space<vmem>>, vector<160x128xbf16>
    %cst_32 = arith.constant dense<0.000000e+00> : vector<256x128xf32>
    %58 = tpu.matmul %56, %57, %cst_32 {dimension_numbers = #tpu.dot_dimension_numbers<[1], [0], [0], [1], [0, 0, 1, 1], [], []>} : vector<256x160xbf16>, vector<160x128xbf16>, vector<256x128xf32> -> vector<256x128xf32>
    %c0_33 = arith.constant 0 : index
    %c0_34 = arith.constant 0 : index
    %59 = vector.load %arg4[%c0_33, %c0_34] : memref<1x128xf32, #tpu.memory_space<vmem>>, vector<1x128xf32>
    %60 = vector.broadcast %59 : vector<1x128xf32> to vector<256x128xf32>
    %61 = arith.addf %58, %60 : vector<256x128xf32>
    %cst_35 = arith.constant 0.000000e+00 : f32
    %62 = vector.broadcast %cst_35 : f32 to vector<256x128xf32>
    %63 = arith.maximumf %61, %62 : vector<256x128xf32>
    %64 = vector.shape_cast %63 : vector<256x128xf32> to vector<16x16x128xf32>
    %c0_36 = arith.constant 0 : index
    %c0_37 = arith.constant 0 : index
    %65 = vector.load %arg5[%c0_36, %c0_37] : memref<16x128xf32, #tpu.memory_space<vmem>>, vector<16x128xf32>
    %66 = vector.shape_cast %65 : vector<16x128xf32> to vector<1x16x128xf32>
    %67 = vector.broadcast %66 : vector<1x16x128xf32> to vector<16x16x128xf32>
    %68 = arith.mulf %64, %67 : vector<16x16x128xf32>
    %cst_38 = arith.constant dense<0xFF800000> : vector<16x128xf32>
    %69 = vector.multi_reduction <maximumf>, %68, %cst_38 [1] : vector<16x16x128xf32> to vector<16x128xf32>
    %70 = arith.truncf %69 : vector<16x128xf32> to vector<16x128xbf16>
    %c0_39 = arith.constant 0 : index
    %c0_40 = arith.constant 0 : index
    %71 = vector.load %arg6[%c0_39, %c0_40] : memref<128x128xbf16, #tpu.memory_space<vmem>>, vector<128x128xbf16>
    %cst_41 = arith.constant dense<0.000000e+00> : vector<16x128xf32>
    %72 = tpu.matmul %70, %71, %cst_41 {dimension_numbers = #tpu.dot_dimension_numbers<[1], [0], [0], [1], [0, 0, 1, 1], [], []>} : vector<16x128xbf16>, vector<128x128xbf16>, vector<16x128xf32> -> vector<16x128xf32>
    %c0_42 = arith.constant 0 : index
    %c0_43 = arith.constant 0 : index
    %73 = vector.load %arg7[%c0_42, %c0_43] : memref<1x128xf32, #tpu.memory_space<vmem>>, vector<1x128xf32>
    %74 = vector.broadcast %73 : vector<1x128xf32> to vector<16x128xf32>
    %75 = arith.addf %72, %74 : vector<16x128xf32>
    %c0_44 = arith.constant 0 : index
    %c0_45 = arith.constant 0 : index
    %76 = vector.load %arg8[%c0_44, %c0_45] : memref<16x128xf32, #tpu.memory_space<vmem>>, vector<16x128xf32>
    tpu.vector_store %arg8[%c0_44, %c0_45], %75 {strides = array<i32>} : memref<16x128xf32, #tpu.memory_space<vmem>>, vector<16x128xf32>,
    return
  }
  func.func @transform_0(%arg0: i32) -> (i32, i32) {
    %c0_i32 = arith.constant 0 : i32
    %c0_i32_0 = arith.constant 0 : i32
    return %arg0, %c0_i32 : i32, i32
  }
  func.func @transform_1(%arg0: i32) -> (i32, i32) {
    %c0_i32 = arith.constant 0 : i32
    %c0_i32_0 = arith.constant 0 : i32
    %c0_i32_1 = arith.constant 0 : i32
    return %c0_i32, %c0_i32_0 : i32, i32
  }
  func.func @transform_2(%arg0: i32) -> (i32, i32) {
    %c0_i32 = arith.constant 0 : i32
    %c0_i32_0 = arith.constant 0 : i32
    %c0_i32_1 = arith.constant 0 : i32
    return %c0_i32, %c0_i32_0 : i32, i32
  }
  func.func @transform_3(%arg0: i32) -> (i32, i32) {
    %c0_i32 = arith.constant 0 : i32
    %c0_i32_0 = arith.constant 0 : i32
    %c0_i32_1 = arith.constant 0 : i32
    return %c0_i32, %c0_i32_0 : i32, i32
  }
  func.func @transform_4(%arg0: i32) -> (i32, i32) {
    %c0_i32 = arith.constant 0 : i32
    %c0_i32_0 = arith.constant 0 : i32
    %c0_i32_1 = arith.constant 0 : i32
    return %c0_i32, %c0_i32_0 : i32, i32
  }
  func.func @transform_5(%arg0: i32) -> (i32, i32) {
    %c0_i32 = arith.constant 0 : i32
    %c0_i32_0 = arith.constant 0 : i32
    %c0_i32_1 = arith.constant 0 : i32
    return %c0_i32, %c0_i32_0 : i32, i32
  }
  func.func @transform_6(%arg0: i32) -> (i32, i32) {
    %c0_i32 = arith.constant 0 : i32
    %c0_i32_0 = arith.constant 0 : i32
    %c0_i32_1 = arith.constant 0 : i32
    return %c0_i32, %c0_i32_0 : i32, i32
  }
  func.func @transform_7(%arg0: i32) -> (i32, i32) {
    %c0_i32 = arith.constant 0 : i32
    %c0_i32_0 = arith.constant 0 : i32
    return %arg0, %c0_i32 : i32, i32
  }
}

</mosaic_0001>

<bundles_post_ra>
// kernel: forward.1
= control target key start
LH: loop header
LB: loop body
LE: loop exit
PB: predicated region body
PF: predicated region fallthrough
CT: control target
= control target key end

     0   :  { %s2893_s24 = smov 0   ;;  %s3479_s0 = inlined_call_operand.vmem [shape: s32[768,1], index: 0, kind: input, shape index: {}]   ;;  %s3480_s1 = inlined_call_operand.vmem [shape: bf16[128,32], index: 1, kind: input, shape index: {}]   ;;  %s3481_s2 = inlined_call_operand.vmem [shape: bf16[160,128], index: 2, kind: input, shape index: {}]   ;;  %s3482_s3 = inlined_call_operand.vmem [shape: f32[1,128], index: 3, kind: input, shape index: {}]   ;;  %s3483_s4 = inlined_call_operand.vmem [shape: f32[16,128], index: 4, kind: input, shape index: {}]   ;;  %s3484_s5 = inlined_call_operand.vmem [shape: bf16[128,128], index: 5, kind: input, shape index: {}]   ;;  %s3485_s6 = inlined_call_operand.vmem [shape: f32[1,128], index: 6, kind: input, shape index: {}]   ;;  %s3486_s7 = inlined_call_operand.vmem [shape: f32[32,128], index: 7, kind: output, shape index: {}]  }
   0x1 LB: > { %s2562_s25 = sadd.s32 4294967295, %s2846_s24   ;;  %p2566_p0 = scmp.ge.s32.totalorder %s2846_s24, 1  ;;  %s2846_s24 = sphi %s2893_s24, %s17_s24  }
   0x2   : > { %p238_p1 = scmp.lt.s32.totalorder %s2846_s24, 3 }
   0x4   : > { %p239_p2 = pnand %p2566_p0, %p238_p1 }
   0x5   : > { %s270_s26 = smul.u32 (!%p239_p2), 48, %s2562_s25  ;;  %s2851_s8 = smov (!%p239_p2), 64  }
   0x6   : > { %242 = sbr.rel (%p239_p2) target bundleno = 973 (0x3cd), region = 48  ;;  %s2852_s9 = smov (!%p239_p2), 32  }
   0x7   : > { %p271_p3 = scmp.lt.s32.totalorder (!%p239_p2), %s270_s26, 95  ;;  %s2568_s29 = sshll.u32 (!%p239_p2), %s2562_s25, 1 }
   0x8   : > { %p277_p4 = scmp.lt.s32.totalorder (!%p239_p2), %s2568_s29, 3 }
   0xb   : > { %v2848_v0 = vmov 0   ;;  %s3496_s26 = smov (!%p271_p3, %s270_s26), 95  ;;  %v2795_v25 = vld [vmem:[%s3480_s1 + $0x38] sm:$0xff]  ;;  %v2794_v29 = vld [vmem:[%s3480_s1 + $0x30] sm:$0xff]  ;;  %v2793_v32 = vld [vmem:[%s3480_s1 + $0x28] sm:$0xff]  ;;  %v311_v46 = vlaneseq  ;;  %s3498_s29 = smov (!%p277_p4, %s2568_s29), 3 }
   0xc   : > { %2837 = vset.pattern.permute.xlu2 %v2848_v0  ;;  %2836 = vset.pattern.permute.xlu1 %v2848_v0  ;;  %s2567_s27 = sshll.u32 %s3496_s26, 3  ;;  %v2792_v34 = vld [vmem:[%s3480_s1 + $0x20] sm:$0xff]  ;;  %v2791_v35 = vld [vmem:[%s3480_s1 + $0x18] sm:$0xff]  ;;  %v2790_v39 = vld [vmem:[%s3480_s1 + $0x10] sm:$0xff]  ;;  %v2849_v55 = vmov 1.0|1.0  }
   0xd   : > { %2835 = vset.pattern.permute.xlu0 %v2848_v0  ;;  %s2906_s30 = scalar_lea.vmem %s3479_s0, %s2567_s27  ;;  %439 = vmatpush.bf16.msra.mxu0 %v2795_v25  ;;  %v2789_v40 = vld [vmem:[%s3480_s1 + $0x8] sm:$0xff]  ;;  %v2788_v44 = vld [vmem:[%s3480_s1] sm:$0xff]  ;;  %v2971_v50 = vand.u32 127, %v311_v46 }
   0xe   : > { %v493_v1 = vld [vmem:[%s2906_s30 + $0x70] sm:$0xff]  ;;  %v491_v2 = vld [vmem:[%s2906_s30 + $0x60] sm:$0xff]  ;;  %v494_v4 = vld [vmem:[%s2906_s30 + $0x78] sm:$0xff]  ;;  %581 = vmatpush.bf16.msra.mxu2 %v2795_v25  ;;  %865 = vmatpush.bf16.msra.mxu3 %v2795_v25 }
   0xf   : > { %v299_v3 = vld [vmem:[%s2906_s30] sm:$0xff]  ;;  %510 = vperm.xlu1 %2836, %v493_v1   ;;  %504 = vperm.xlu0 %2835, %v491_v2   ;;  %v492_v5 = vld [vmem:[%s2906_s30 + $0x68] sm:$0xff]  ;;  %v301_v9 = vld [vmem:[%s2906_s30 + $0x10] sm:$0xff] }
  0x10   : > { %314 = vperm.xlu2 %2837, %v299_v3   ;;  %v300_v6 = vld [vmem:[%s2906_s30 + $0x8] sm:$0xff]  ;;  %v495_v8 = vld [vmem:[%s2906_s30 + $0x80] sm:$0xff]  ;;  %v497_v10 = vld [vmem:[%s2906_s30 + $0x90] sm:$0xff] }
  0x11   : > { %v496_v7 = vld [vmem:[%s2906_s30 + $0x88] sm:$0xff]  ;;  %v302_v11 = vld [vmem:[%s2906_s30 + $0x18] sm:$0xff]  ;;  %v303_v14 = vld [vmem:[%s2906_s30 + $0x20] sm:$0xff]  ;;  %440 = vmatpush.bf16.msra.mxu0 %v2794_v29 }
  0x12   : > { %v498_v12 = vld [vmem:[%s2906_s30 + $0x98] sm:$0xff]  ;;  %v304_v13 = vld [vmem:[%s2906_s30 + $0x28] sm:$0xff]  ;;  %v499_v15 = vld [vmem:[%s2906_s30 + $0xa0] sm:$0xff]  ;;  %582 = vmatpush.bf16.msra.mxu2 %v2794_v29  ;;  %866 = vmatpush.bf16.msra.mxu3 %v2794_v29 }
  0x13   : > { %v305_v16 = vld [vmem:[%s2906_s30 + $0x30] sm:$0xff]  ;;  %v500_v17 = vld [vmem:[%s2906_s30 + $0xa8] sm:$0xff]  ;;  %v306_v18 = vld [vmem:[%s2906_s30 + $0x38] sm:$0xff] }
  0x14   : > { %v502_v19 = vld [vmem:[%s2906_s30 + $0xb8] sm:$0xff]  ;;  %v501_v20 = vld [vmem:[%s2906_s30 + $0xb0] sm:$0xff]  ;;  %v307_v21 = vld [vmem:[%s2906_s30 + $0x40] sm:$0xff] }
  0x15   : > { %v633_v22 = vld [vmem:[%s2906_s30 + $0xc0] sm:$0xff]  ;;  %v308_v23 = vld [vmem:[%s2906_s30 + $0x48] sm:$0xff]  ;;  %v310_v26 = vld [vmem:[%s2906_s30 + $0x58] sm:$0xff]  ;;  %441 = vmatpush.bf16.msra.mxu0 %v2793_v32 }
  0x16   : > { %v634_v24 = vld [vmem:[%s2906_s30 + $0xc8] sm:$0xff]  ;;  %v309_v27 = vld [vmem:[%s2906_s30 + $0x50] sm:$0xff]  ;;  %v637_v30 = vld [vmem:[%s2906_s30 + $0xe0] sm:$0xff]  ;;  %583 = vmatpush.bf16.msra.mxu2 %v2793_v32  ;;  %867 = vmatpush.bf16.msra.mxu3 %v2793_v32 }
  0x17   : > { %513 = vperm.xlu1 %2836, %v494_v4   ;;  %507 = vperm.xlu0 %2835, %v492_v5   ;;  %v635_v28 = vld [vmem:[%s2906_s30 + $0xd0] sm:$0xff]  ;;  %v636_v31 = vld [vmem:[%s2906_s30 + $0xd8] sm:$0xff]  ;;  %v638_v33 = vld [vmem:[%s2906_s30 + $0xe8] sm:$0xff] }
  0x18   : > { %317 = vperm.xlu2 %2837, %v300_v6   ;;  %v640_v36 = vld [vmem:[%s2906_s30 + $0xf8] sm:$0xff]  ;;  %v639_v37 = vld [vmem:[%s2906_s30 + $0xf0] sm:$0xff]  ;;  %v641_v38 = vld [vmem:[%s2906_s30 + $0x100] sm:$0xff] }
  0x19   : > { %442 = vmatpush.bf16.msra.mxu0 %v2792_v34  ;;  %v775_v41 = vld [vmem:[%s2906_s30 + $0x120] sm:$0xff]  ;;  %v642_v42 = vld [vmem:[%s2906_s30 + $0x108] sm:$0xff]  ;;  %v644_v47 = vld [vmem:[%s2906_s30 + $0x118] sm:$0xff] }
  0x1a   : > { %584 = vmatpush.bf16.msra.mxu2 %v2792_v34  ;;  %868 = vmatpush.bf16.msra.mxu3 %v2792_v34  ;;  %v776_v43 = vld [vmem:[%s2906_s30 + $0x128] sm:$0xff]  ;;  %v643_v48 = vld [vmem:[%s2906_s30 + $0x110] sm:$0xff]  ;;  %v779_v52 = vld [vmem:[%s2906_s30 + $0x140] sm:$0xff] }
  0x1b   : > { %v777_v49 = vld [vmem:[%s2906_s30 + $0x130] sm:$0xff]  ;;  %v778_v53 = vld [vmem:[%s2906_s30 + $0x138] sm:$0xff]  ;;  %v780_v54 = vld [vmem:[%s2906_s30 + $0x148] sm:$0xff] }
  0x1c   : > { %v782_v57 = vld [vmem:[%s2906_s30 + $0x158] sm:$0xff]  ;;  %v781_v58 = vld [vmem:[%s2906_s30 + $0x150] sm:$0xff]  ;;  %v783_v59 = vld [vmem:[%s2906_s30 + $0x160] sm:$0xff] }
  0x1d   : > { %443 = vmatpush.bf16.msra.mxu0 %v2791_v35  ;;  %v785_v62 = vld [vmem:[%s2906_s30 + $0x170] sm:$0xff]  ;;  %v784_v63 = vld [vmem:[%s2906_s30 + $0x168] sm:$0xff]  ;;  %v786_v0 = vld [vmem:[%s2906_s30 + $0x178] sm:$0xff]  ;;  %s2850_s30 = smov 96  }
  0x1e   : > { %585 = vmatpush.bf16.msra.mxu2 %v2791_v35  ;;  %869 = vmatpush.bf16.msra.mxu3 %v2791_v35 }
  0x1f   : > { %519 = vperm.xlu1 %2836, %v496_v7   ;;  %516 = vperm.xlu0 %2835, %v495_v8  }
  0x20   : > { %320 = vperm.xlu2 %2837, %v301_v9  }
  0x21   : > { %444 = vmatpush.bf16.msra.mxu0 %v2790_v39 }
  0x22   : > { %586 = vmatpush.bf16.msra.mxu2 %v2790_v39  ;;  %870 = vmatpush.bf16.msra.mxu3 %v2790_v39 }
  0x25   : > { %445 = vmatpush.bf16.msra.mxu0 %v2789_v40 }
  0x26   : > { %587 = vmatpush.bf16.msra.mxu2 %v2789_v40  ;;  %871 = vmatpush.bf16.msra.mxu3 %v2789_v40 }
  0x27   : > { %522 = vperm.xlu1 %2836, %v497_v10   ;;  %323 = vperm.xlu0 %2835, %v302_v11  }
  0x28   : > { %525 = vperm.xlu2 %2837, %v498_v12  }
  0x29   : > { %446 = vmatpush.bf16.msra.mxu0 %v2788_v44 }
  0x2a   : > { %588 = vmatpush.bf16.msra.mxu2 %v2788_v44  ;;  %872 = vmatpush.bf16.msra.mxu3 %v2788_v44 }
  0x2e   : > { %723 = vmatpush.bf16.msrb.mxu2 %v2795_v25 }
  0x2f   : > { %329 = vperm.xlu1 %2836, %v304_v13   ;;  %326 = vperm.xlu0 %2835, %v303_v14  }
  0x30   : > { %528 = vperm.xlu2 %2837, %v499_v15  }
  0x32   : > { %724 = vmatpush.bf16.msrb.mxu2 %v2794_v29 }
  0x36   : > { %725 = vmatpush.bf16.msrb.mxu2 %v2793_v32 }
  0x37   : > { %332 = vperm.xlu1 %2836, %v305_v16   ;;  %531 = vperm.xlu0 %2835, %v500_v17  }
  0x38   : > { %335 = vperm.xlu2 %2837, %v306_v18  }
  0x3a   : > { %726 = vmatpush.bf16.msrb.mxu2 %v2792_v34 }
  0x3e   : > { %727 = vmatpush.bf16.msrb.mxu2 %v2791_v35 }
  0x3f   : > { %537 = vperm.xlu1 %2836, %v502_v19   ;;  %534 = vperm.xlu0 %2835, %v501_v20  }
  0x40   : > { %338 = vperm.xlu2 %2837, %v307_v21  }
  0x42   : > { %728 = vmatpush.bf16.msrb.mxu2 %v2790_v39 }
  0x46   : > { %729 = vmatpush.bf16.msrb.mxu2 %v2789_v40 }
  0x47   : > { %646 = vperm.xlu1 %2836, %v633_v22   ;;  %341 = vperm.xlu0 %2835, %v308_v23  }
  0x48   : > { %649 = vperm.xlu2 %2837, %v634_v24  }
  0x4a   : > { %730 = vmatpush.bf16.msrb.mxu2 %v2788_v44  ;;  %v2805_v44 = vld [vmem:[%s3481_s2 + $0x48] sm:$0xff] }
  0x4b   : > { %2090 = vmatpush.bf16.msra.mxu1 %v2805_v44 }
  0x4f   : > { %347 = vperm.xlu1 %2836, %v310_v26   ;;  %344 = vperm.xlu0 %2835, %v309_v27  }
  0x50   : > { %652 = vperm.xlu2 %2837, %v635_v28  }
  0x57   : > { %658 = vperm.xlu1 %2836, %v637_v30   ;;  %655 = vperm.xlu0 %2835, %v636_v31  }
  0x58   : > { %661 = vperm.xlu2 %2837, %v638_v33  }
  0x5f   : > { %667 = vperm.xlu1 %2836, %v640_v36   ;;  %664 = vperm.xlu0 %2835, %v639_v37  }
  0x60   : > { %670 = vperm.xlu2 %2837, %v641_v38  }
  0x67   : > { %788 = vperm.xlu1 %2836, %v775_v41   ;;  %673 = vperm.xlu0 %2835, %v642_v42  }
  0x68   : > { %791 = vperm.xlu2 %2837, %v776_v43  }
  0x6a   : > { %v315_v45 = vpop.permute.xlu2 %314 }
  0x6b   : > { %vm349_vm0 = vcmp.eq.s32.totalorder %v315_v45, %v2971_v50  ;;  %v2804_v45 = vld [vmem:[%s3481_s2 + $0x40] sm:$0xff] }
  0x6c   : > { %2091 = vmatpush.bf16.msra.mxu1 %v2804_v45 }
  0x6f   : > { %679 = vperm.xlu1 %2836, %v644_v47   ;;  %676 = vperm.xlu0 %2835, %v643_v48  }
  0x70   : > { %794 = vperm.xlu2 %2837, %v777_v49  }
  0x72   : > { %v318_v51 = vpop.permute.xlu2 %317 }
  0x73   : > { %vm350_vm1 = vcmp.eq.s32.totalorder %v318_v51, %v2971_v50 }
  0x74   : > { %vm2614_vm2 = vmpackc.low %vm350_vm1, %vm349_vm0 }
  0x75   : > { %2615 = vmatmul.msk.bf16.vlgmr.msra.gmra.mxu0 %vm2614_vm2, %v2849_v55 }
  0x77   : > { %800 = vperm.xlu1 %2836, %v779_v52   ;;  %797 = vperm.xlu0 %2835, %v778_v53  }
  0x78   : > { %803 = vperm.xlu2 %2837, %v780_v54  }
  0x7a   : > { %v321_v56 = vpop.permute.xlu2 %320 }
  0x7b   : > { %vm351_vm8 = vcmp.eq.s32.totalorder %v321_v56, %v2971_v50 }
  0x7f   : > { %809 = vperm.xlu1 %2836, %v782_v57   ;;  %806 = vperm.xlu0 %2835, %v781_v58  }
  0x80   : > { %812 = vperm.xlu2 %2837, %v783_v59  }
  0x81   : > { %v511_v60 = vpop.permute.xlu1 %510  ;;  %v505_v61 = vpop.permute.xlu0 %504 }
  0x82   : > { %v526_v1 = vpop.permute.xlu2 %525  ;;  %vm539_vm4 = vcmp.eq.s32.totalorder %v505_v61, %v2971_v50  ;;  %vm541_vm6 = vcmp.eq.s32.totalorder %v511_v60, %v2971_v50 }
  0x83   : > { %vm546_vm2 = vcmp.eq.s32.totalorder %v526_v1, %v2971_v50 }
  0x87   : > { %818 = vperm.xlu1 %2836, %v785_v62   ;;  %815 = vperm.xlu0 %2835, %v784_v63  }
  0x88   : > { %821 = vperm.xlu2 %2837, %v786_v0  }
  0x89   : > { %v514_v2 = vpop.permute.xlu1 %513  ;;  %v508_v3 = vpop.permute.xlu0 %507 }
  0x8a   : > { %vm540_vm3 = vcmp.eq.s32.totalorder %v508_v3, %v2971_v50  ;;  %v529_v4 = vpop.permute.xlu2 %528  ;;  %vm542_vm7 = vcmp.eq.s32.totalorder %v514_v2, %v2971_v50 }
  0x8b   : > { %vm2638_vm5 = vmpackc.low %vm540_vm3, %vm539_vm4 }
  0x8c   : > { %2639 = vmatmul.msk.bf16.vlgmr.msra.gmra.mxu2 %vm2638_vm5, %v2849_v55  ;;  %vm2640_vm10 = vmpackc.low %vm542_vm7, %vm541_vm6 }
  0x91   : > { %v520_v5 = vpop.permute.xlu1 %519  ;;  %v517_v6 = vpop.permute.xlu0 %516 }
  0x92   : > { %v336_v9 = vpop.permute.xlu2 %335  ;;  %vm544_vm12 = vcmp.eq.s32.totalorder %v520_v5, %v2971_v50  ;;  %vm543_vm13 = vcmp.eq.s32.totalorder %v517_v6, %v2971_v50 }
  0x93   : > { %vm2642_vm0 = vmpackc.low %vm544_vm12, %vm543_vm13  ;;  %vm356_vm5 = vcmp.eq.s32.totalorder %v336_v9, %v2971_v50 }
  0x99   : > { %v523_v7 = vpop.permute.xlu1 %522  ;;  %v324_v8 = vpop.permute.xlu0 %323 }
  0x9a   : > { %vm352_vm9 = vcmp.eq.s32.totalorder %v324_v8, %v2971_v50  ;;  %v339_v12 = vpop.permute.xlu2 %338  ;;  %vm545_vm3 = vcmp.eq.s32.totalorder %v523_v7, %v2971_v50 }
  0x9b   : > { %vm2616_vm11 = vmpackc.low %vm352_vm9, %vm351_vm8  ;;  %vm547_vm9 = vcmp.eq.s32.totalorder %v529_v4, %v2971_v50 }
  0x9c   : > { %2617 = vmatmul.msk.bf16.gmra.mxu0 %vm2616_vm11, %v2849_v55  ;;  %2641 = vmatmul.msk.bf16.gmra.mxu2 %vm2640_vm10, %v2849_v55  ;;  %vm2644_vm6 = vmpackc.low %vm546_vm2, %vm545_vm3 }
  0xa1   : > { %v330_v10 = vpop.permute.xlu1 %329  ;;  %v327_v11 = vpop.permute.xlu0 %326 }
  0xa2   : > { %vm354_vm14 = vcmp.eq.s32.totalorder %v330_v10, %v2971_v50  ;;  %vm353_vm15 = vcmp.eq.s32.totalorder %v327_v11, %v2971_v50  ;;  %v3000_v15 = vpop.permute.xlu2 %649 }
  0xa3   : > { %vm2618_vm1 = vmpackc.low %vm354_vm14, %vm353_vm15  ;;  %vm357_vm14 = vcmp.eq.s32.totalorder %v339_v12, %v2971_v50 }
  0xa9   : > { %v333_v13 = vpop.permute.xlu1 %332  ;;  %v532_v14 = vpop.permute.xlu0 %531 }
  0xaa   : > { %v3004_v18 = vpop.permute.xlu2 %652  ;;  %vm355_vm4 = vcmp.eq.s32.totalorder %v333_v13, %v2971_v50  ;;  %vm548_vm8 = vcmp.eq.s32.totalorder %v532_v14, %v2971_v50 }
  0xab   : > { %vm2620_vm7 = vmpackc.low %vm356_vm5, %vm355_vm4 }
  0xac   : > { %2619 = vmatmul.msk.bf16.gmra.mxu0 %vm2618_vm1, %v2849_v55  ;;  %2643 = vmatmul.msk.bf16.gmra.mxu2 %vm2642_vm0, %v2849_v55  ;;  %vm2646_vm11 = vmpackc.low %vm548_vm8, %vm547_vm9 }
  0xb1   : > { %v538_v16 = vpop.permute.xlu1 %537  ;;  %v535_v17 = vpop.permute.xlu0 %534 }
  0xb2   : > { %v662_v23 = vpop.permute.xlu2 %661  ;;  %vm550_vm4 = vcmp.eq.s32.totalorder %v538_v16, %v2971_v50  ;;  %vm549_vm5 = vcmp.eq.s32.totalorder %v535_v17, %v2971_v50 }
  0xb3   : > { %vm686_vm12 = vcmp.eq.s32.totalorder %v662_v23, %v2971_v50  ;;  %vm2648_vm8 = vmpackc.low %vm550_vm4, %vm549_vm5 }
  0xb9   : > { %v647_v19 = vpop.permute.xlu1 %646  ;;  %v342_v20 = vpop.permute.xlu0 %341 }
  0xba   : > { %vm358_vm10 = vcmp.eq.s32.totalorder %v342_v20, %v2971_v50  ;;  %v671_v27 = vpop.permute.xlu2 %670  ;;  %vm681_vm5 = vcmp.eq.s32.totalorder %v647_v19, %v2971_v50 }
  0xbb   : > { %vm2622_vm0 = vmpackc.low %vm358_vm10, %vm357_vm14 }
  0xbc   : > { %2621 = vmatmul.msk.bf16.gmra.mxu0 %vm2620_vm7, %v2849_v55  ;;  %2645 = vmatmul.msk.bf16.gmra.mxu2 %vm2644_vm6, %v2849_v55 }
  0xc1   : > { %v348_v21 = vpop.permute.xlu1 %347  ;;  %v345_v22 = vpop.permute.xlu0 %344 }
  0xc2   : > { %vm360_vm6 = vcmp.eq.s32.totalorder %v348_v21, %v2971_v50  ;;  %vm359_vm7 = vcmp.eq.s32.totalorder %v345_v22, %v2971_v50  ;;  %v792_v31 = vpop.permute.xlu2 %791 }
  0xc3   : > { %vm2624_vm9 = vmpackc.low %vm360_vm6, %vm359_vm7  ;;  %vm824_vm10 = vcmp.eq.s32.totalorder %v792_v31, %v2971_v50  ;;  %vm682_vm6 = vcmp.eq.s32.totalorder %v3000_v15, %v2971_v50 }
  0xc9   : > { %v659_v24 = vpop.permute.xlu1 %658  ;;  %v656_v25 = vpop.permute.xlu0 %655 }
  0xca   : > { %vm685_vm13 = vcmp.eq.s32.totalorder %v659_v24, %v2971_v50  ;;  %v795_v38 = vpop.permute.xlu2 %794 }
  0xcb   : > { %vm3016_vm15 = vmpackc.low %vm686_vm12, %vm685_vm13  ;;  %vm689_vm13 = vcmp.eq.s32.totalorder %v671_v27, %v2971_v50 }
  0xcc   : > { %2623 = vmatmul.msk.bf16.gmra.mxu0 %vm2622_vm0, %v2849_v55  ;;  %2647 = vmatmul.msk.bf16.gmra.mxu2 %vm2646_vm11, %v2849_v55 }
  0xd1   : > { %v668_v28 = vpop.permute.xlu1 %667  ;;  %v665_v29 = vpop.permute.xlu0 %664 }
  0xd2   : > { %vm688_vm1 = vcmp.eq.s32.totalorder %v668_v28, %v2971_v50  ;;  %vm687_vm2 = vcmp.eq.s32.totalorder %v665_v29, %v2971_v50  ;;  %v804_v42 = vpop.permute.xlu2 %803 }
  0xd3   : > { %vm3024_vm3 = vmpackc.low %vm688_vm1, %vm687_vm2 }
  0xd9   : > { %v789_v32 = vpop.permute.xlu1 %788  ;;  %v674_v33 = vpop.permute.xlu0 %673 }
  0xda   : > { %vm823_vm11 = vcmp.eq.s32.totalorder %v789_v32, %v2971_v50  ;;  %vm690_vm12 = vcmp.eq.s32.totalorder %v674_v33, %v2971_v50  ;;  %v813_v51 = vpop.permute.xlu2 %812 }
  0xdb   : > { %vm2686_vm14 = vmpackc.low %vm824_vm10, %vm823_vm11  ;;  %vm478_vm11 = vcmask 261120  }
  0xdc   : > { %vm3036_vm0 = vmpackc.low %vm690_vm12, %vm689_vm13  ;;  %2687 = vmatmul.msk.bf16.vlgmr.msra.gmra.mxu3 %vm2686_vm14, %v2849_v55  ;;  %2625 = vmatmul.msk.bf16.gmra.mxu0 %vm2624_vm9, %v2849_v55  ;;  %vm825_vm9 = vcmp.eq.s32.totalorder %v795_v38, %v2971_v50  ;;  %vm684_vm12 = vcmp.eq.s32.totalorder %v656_v25, %v2971_v50  ;;  %vm683_vm14 = vcmp.eq.s32.totalorder %v3004_v18, %v2971_v50 }
  0xdd   : > { %2649 = vmatmul.msk.bf16.gmra.mxu2 %vm2648_vm8, %v2849_v55  ;;  %vm2662_vm8 = vmpackc.low %vm682_vm6, %vm681_vm5 }
  0xe1   : > { %v680_v35 = vpop.permute.xlu1 %679  ;;  %v677_v36 = vpop.permute.xlu0 %676 }
  0xe2   : > { %vm692_vm1 = vcmp.eq.s32.totalorder %v680_v35, %v2971_v50  ;;  %vm691_vm2 = vcmp.eq.s32.totalorder %v677_v36, %v2971_v50  ;;  %v822_v21 = vpop.permute.xlu2 %821 }
  0xe3   : > { %vm3045_vm4 = vmpackc.low %vm692_vm1, %vm691_vm2  ;;  %vm828_vm2 = vcmp.eq.s32.totalorder %v804_v42, %v2971_v50 }
  0xe4   : > { %vm2664_vm1 = vmpackc.low %vm684_vm12, %vm683_vm14  ;;  %vm834_vm12 = vcmp.eq.s32.totalorder %v822_v21, %v2971_v50  ;;  %vm2419_vm14 = vcmask 1041409  }
  0xe9   : > { %v798_v39 = vpop.permute.xlu0 %797  ;;  %v801_v41 = vpop.permute.xlu1 %800 }
  0xea   : > { %vm826_vm7 = vcmp.eq.s32.totalorder %v798_v39, %v2971_v50  ;;  %vm827_vm13 = vcmp.eq.s32.totalorder %v801_v41, %v2971_v50 }
  0xeb   : > { %vm2688_vm10 = vmpackc.low %vm826_vm7, %vm825_vm9 }
  0xec   : > { %2689 = vmatmul.msk.bf16.gmra.mxu3 %vm2688_vm10, %v2849_v55  ;;  %vm2690_vm5 = vmpackc.low %vm828_vm2, %vm827_vm13  ;;  %vm831_vm10 = vcmp.eq.s32.totalorder %v813_v51, %v2971_v50  ;;  %vm2425_vm2 = vcmask 1044484  }
  0xed   : > { %2663 = vmatmul.msk.bf16.vlgmr.msrb.gmra.mxu2 %vm2662_vm8, %v2849_v55 }
  0xf1   : > { %v810_v46 = vpop.permute.xlu1 %809  ;;  %v807_v47 = vpop.permute.xlu0 %806 }
  0xf2   : > { %v448_v40 = vpop.f32.mrf.mxu0  ;;  %vm830_vm6 = vcmp.eq.s32.totalorder %v810_v46, %v2971_v50  ;;  %vm829_vm7 = vcmp.eq.s32.totalorder %v807_v47, %v2971_v50 }
  0xf3   : > { %479 = vst.msk [vmem:[#allocation2] sm:$0xff] %vm478_vm11, %v448_v40  ;;  %vm2692_vm8 = vmpackc.low %vm830_vm6, %vm829_vm7  ;;  %vm2429_vm6 = vcmask 1046534   ;;  %vm2431_vm7 = vcmask 1047559  }
  0xf9   : > { %v816_v49 = vpop.permute.xlu0 %815  ;;  %v819_v16 = vpop.permute.xlu1 %818 }
  0xfa   : > { %v450_v43 = vpop.f32.mrf.mxu0  ;;  %vm832_vm9 = vcmp.eq.s32.totalorder %v816_v49, %v2971_v50 }
  0xfb   : > { %480 = vst.msk [vmem:[#allocation2 + $0x8] sm:$0xff] %vm478_vm11, %v450_v43 }
  0xfc   : > { %2691 = vmatmul.msk.bf16.gmra.mxu3 %vm2690_vm5, %v2849_v55  ;;  %vm2427_vm5 = vcmask 1045509  }
  0xfd   : > { %2665 = vmatmul.msk.bf16.gmra.mxu2 %vm2664_vm1, %v2849_v55  ;;  %vm2423_vm1 = vcmask 1043459  }
 0x102   : > { %v1173_v54 = vld [vmem:[#allocation2 + $0x4] sm:$0xff] }
 0x103   : > { %v1109_v56 = vld [vmem:[#allocation2 + $0x3] sm:$0xff]  ;;  %v1205_v59 = vpack.c.bf16 %v1173_v54, %v1173_v54 }
 0x104   : > { %v1045_v57 = vld [vmem:[#allocation2 + $0x2] sm:$0xff]  ;;  %v1141_v60 = vpack.c.bf16 %v1109_v56, %v1109_v56 }
 0x105   : > { %v981_v58 = vld [vmem:[#allocation2 + $0x1] sm:$0xff]  ;;  %v1077_v61 = vpack.c.bf16 %v1045_v57, %v1045_v57  ;;  %v1685_v2 = vunpack.c.l.b16 %v1205_v59 }
 0x106   : > { %v1013_v63 = vpack.c.bf16 %v981_v58, %v981_v58  ;;  %v1573_v4 = vunpack.c.l.b16 %v1141_v60 }
 0x107   : > { %v1461_v9 = vunpack.c.l.b16 %v1077_v61 }
 0x108   : > { %v1349_v12 = vunpack.c.l.b16 %v1013_v63 }
 0x10c   : > { %2693 = vmatmul.msk.bf16.gmra.mxu3 %vm2692_vm8, %v2849_v55 }
 0x10d   : > { %2667 = vmatmul.msk.bf16.gmra.mxu2 %vm3016_vm15, %v2849_v55  ;;  %vm2694_vm15 = vmpackc.low %vm832_vm9, %vm831_vm10 }
 0x10f   : > { %v590_v48 = vpop.f32.mrf.mxu2 }
 0x110   : > { %621 = vst.msk [vmem:[#allocation2 + $0x60] sm:$0xff] %vm478_vm11, %v590_v48 }
 0x117   : > { %v592_v52 = vpop.f32.mrf.mxu2 }
 0x118   : > { %622 = vst.msk [vmem:[#allocation2 + $0x68] sm:$0xff] %vm478_vm11, %v592_v52 }
 0x119   : > { %v453_v53 = vpop.f32.mrf.mxu0 }
 0x11a   : > { %481 = vst.msk [vmem:[#allocation2 + $0x10] sm:$0xff] %vm478_vm11, %v453_v53 }
 0x11c   : > { %2695 = vmatmul.msk.bf16.gmra.mxu3 %vm2694_vm15, %v2849_v55 }
 0x11d   : > { %2669 = vmatmul.msk.bf16.gmra.mxu2 %vm3024_vm3, %v2849_v55  ;;  %vm833_vm3 = vcmp.eq.s32.totalorder %v819_v16, %v2971_v50 }
 0x11e   : > { %vm2696_vm13 = vmpackc.low %vm834_vm12, %vm833_vm3 }
 0x11f   : > { %v595_v62 = vpop.f32.mrf.mxu2 }
 0x120   : > { %623 = vst.msk [vmem:[#allocation2 + $0x70] sm:$0xff] %vm478_vm11, %v595_v62 }
 0x121   : > { %v455_v0 = vpop.f32.mrf.mxu0  ;;  %v1174_v1 = vld [vmem:[#allocation2 + $0xc] sm:$0xff] }
 0x122   : > { %v1110_v3 = vld [vmem:[#allocation2 + $0xb] sm:$0xff]  ;;  %482 = vst.msk [vmem:[#allocation2 + $0x18] sm:$0xff] %vm478_vm11, %v455_v0  ;;  %v1206_v6 = vpack.c.bf16 %v1174_v1, %v1174_v1 }
 0x123   : > { %v1046_v5 = vld [vmem:[#allocation2 + $0xa] sm:$0xff]  ;;  %v1142_v7 = vpack.c.bf16 %v1110_v3, %v1110_v3 }
 0x124   : > { %v1078_v8 = vpack.c.bf16 %v1046_v5, %v1046_v5  ;;  %v982_v10 = vld [vmem:[#allocation2 + $0x9] sm:$0xff]  ;;  %v1686_v13 = vunpack.c.l.b16 %v1206_v6 }
 0x125   : > { %v1014_v11 = vpack.c.bf16 %v982_v10, %v982_v10  ;;  %v1574_v14 = vunpack.c.l.b16 %v1142_v7 }
 0x126   : > { %v1462_v15 = vunpack.c.l.b16 %v1078_v8  ;;  %v1717_v18 = vpack.c.b16 %v1686_v13, %v1685_v2 }
 0x127   : > { %v1350_v17 = vunpack.c.l.b16 %v1014_v11  ;;  %v1605_v19 = vpack.c.b16 %v1574_v14, %v1573_v4  ;;  %v597_v22 = vpop.f32.mrf.mxu2 }
 0x128   : > { %v1493_v20 = vpack.c.b16 %v1462_v15, %v1461_v9  ;;  %624 = vst.msk [vmem:[#allocation2 + $0x78] sm:$0xff] %vm478_vm11, %v597_v22  ;;  %2738 = vmatmul.msk.bf16.vlgmr.msra.gmra.mxu1 %vm478_vm11, %v1717_v18 }
 0x129   : > { %v1381_v23 = vpack.c.b16 %v1350_v17, %v1349_v12  ;;  %1621 = vrot.lane.b32.xlu2 %v1605_v19, %s2850_s30  ;;  %v458_v24 = vpop.f32.mrf.mxu0 }
 0x12a   : > { %1509 = vrot.lane.b32.xlu1 %v1493_v20, %s2851_s8  ;;  %483 = vst.msk [vmem:[#allocation2 + $0x20] sm:$0xff] %vm478_vm11, %v458_v24 }
 0x12b   : > { %1397 = vrot.lane.b32.xlu0 %v1381_v23, %s2852_s9  ;;  %v2803_v23 = vld [vmem:[%s3481_s2 + $0x38] sm:$0xff] }
 0x12c   : > { %2697 = vmatmul.msk.bf16.gmra.mxu3 %vm2696_vm13, %v2849_v55  ;;  %1995 = vmatpush.bf16.msrb.mxu0 %v2803_v23 }
 0x12d   : > { %2671 = vmatmul.msk.bf16.gmra.mxu2 %vm3036_vm0, %v2849_v55  ;;  %2814 = vmatpush.bf16.msrb.mxu3 %v2803_v23  ;;  %vm1781_vm0 = vcmask 523264  }
 0x12f   : > { %v600_v25 = vpop.f32.mrf.mxu2 }
 0x130   : > { %625 = vst.msk [vmem:[#allocation2 + $0x80] sm:$0xff] %vm478_vm11, %v600_v25 }
 0x131   : > { %v460_v26 = vpop.f32.mrf.mxu0  ;;  %v1175_v27 = vld [vmem:[#allocation2 + $0x1c] sm:$0xff] }
 0x132   : > { %484 = vst.msk [vmem:[#allocation2 + $0x28] sm:$0xff] %vm478_vm11, %v460_v26  ;;  %v1111_v28 = vld [vmem:[#allocation2 + $0x1b] sm:$0xff]  ;;  %v1207_v31 = vpack.c.bf16 %v1175_v27, %v1175_v27  ;;  %v2802_v26 = vld [vmem:[%s3481_s2 + $0x30] sm:$0xff] }
 0x133   : > { %v1047_v29 = vld [vmem:[#allocation2 + $0x1a] sm:$0xff]  ;;  %v1143_v32 = vpack.c.bf16 %v1111_v28, %v1111_v28  ;;  %1996 = vmatpush.bf16.msrb.mxu0 %v2802_v26  ;;  %2815 = vmatpush.bf16.msrb.mxu3 %v2802_v26 }
 0x134   : > { %v983_v30 = vld [vmem:[#allocation2 + $0x19] sm:$0xff]  ;;  %v1079_v33 = vpack.c.bf16 %v1047_v29, %v1047_v29  ;;  %v1687_v44 = vunpack.c.l.b16 %v1207_v31  ;;  %v2801_v29 = vld [vmem:[%s3481_s2 + $0x28] sm:$0xff] }
 0x135   : > { %v1015_v39 = vpack.c.bf16 %v983_v30, %v983_v30  ;;  %v1575_v45 = vunpack.c.l.b16 %v1143_v32  ;;  %v2800_v32 = vld [vmem:[%s3481_s2 + $0x20] sm:$0xff] }
 0x136   : > { %v1463_v49 = vunpack.c.l.b16 %v1079_v33 }
 0x137   : > { %v602_v50 = vpop.f32.mrf.mxu2  ;;  %v1351_v52 = vunpack.c.l.b16 %v1015_v39  ;;  %1997 = vmatpush.bf16.msrb.mxu0 %v2801_v29  ;;  %2816 = vmatpush.bf16.msrb.mxu3 %v2801_v29 }
 0x138   : > { %626 = vst.msk [vmem:[#allocation2 + $0x88] sm:$0xff] %vm478_vm11, %v602_v50 }
 0x139   : > { %v463_v34 = vpop.f32.mrf.mxu0  ;;  %v1176_v35 = vld [vmem:[#allocation2 + $0x24] sm:$0xff] }
 0x13a   : > { %v1112_v36 = vld [vmem:[#allocation2 + $0x23] sm:$0xff]  ;;  %485 = vst.msk [vmem:[#allocation2 + $0x30] sm:$0xff] %vm478_vm11, %v463_v34  ;;  %v1208_v40 = vpack.c.bf16 %v1176_v35, %v1176_v35 }
 0x13b   : > { %v1048_v38 = vld [vmem:[#allocation2 + $0x22] sm:$0xff]  ;;  %v1144_v41 = vpack.c.bf16 %v1112_v36, %v1112_v36  ;;  %1998 = vmatpush.bf16.msrb.mxu0 %v2800_v32  ;;  %2817 = vmatpush.bf16.msrb.mxu3 %v2800_v32 }
 0x13c   : > { %v1080_v42 = vpack.c.bf16 %v1048_v38, %v1048_v38  ;;  %v984_v43 = vld [vmem:[#allocation2 + $0x21] sm:$0xff]  ;;  %v1688_v47 = vunpack.c.l.b16 %v1208_v40  ;;  %v2799_v38 = vld [vmem:[%s3481_s2 + $0x18] sm:$0xff] }
 0x13d   : > { %v1016_v46 = vpack.c.bf16 %v984_v43, %v984_v43  ;;  %2673 = vmatmul.msk.bf16.gmra.mxu2 %vm3045_vm4, %v2849_v55  ;;  %v1576_v48 = vunpack.c.l.b16 %v1144_v41  ;;  %v2798_v41 = vld [vmem:[%s3481_s2 + $0x10] sm:$0xff]  ;;  %v1181_v43 = vld [vmem:[#allocation2 + $0x64] sm:$0xff]  ;;  %vm1814_vm4 = vcmask 785408  }
 0x13e   : > { %v1464_v51 = vunpack.c.l.b16 %v1080_v42  ;;  %v1718_v54 = vpack.c.b16 %v1688_v47, %v1687_v44  ;;  %v1182_v42 = vld [vmem:[#allocation2 + $0x6c] sm:$0xff] }
 0x13f   : > { %v1352_v53 = vunpack.c.l.b16 %v1016_v46  ;;  %v1606_v56 = vpack.c.b16 %v1576_v48, %v1575_v45  ;;  %v605_v58 = vpop.f32.mrf.mxu2  ;;  %1999 = vmatpush.bf16.msrb.mxu0 %v2799_v38  ;;  %2818 = vmatpush.bf16.msrb.mxu3 %v2799_v38  ;;  %v1214_v44 = vpack.c.bf16 %v1182_v42, %v1182_v42  ;;  %v2797_v45 = vld [vmem:[%s3481_s2 + $0x8] sm:$0xff]  ;;  %v1213_v48 = vpack.c.bf16 %v1181_v43, %v1181_v43 }
 0x140   : > { %v1494_v57 = vpack.c.b16 %v1464_v51, %v1463_v49  ;;  %627 = vst.msk [vmem:[#allocation2 + $0x90] sm:$0xff] %vm478_vm11, %v605_v58  ;;  %2739 = vmatmul.msk.bf16.gmra.mxu1 %vm478_vm11, %v1718_v54  ;;  %v2796_v51 = vld [vmem:[%s3481_s2] sm:$0xff] }
 0x141   : > { %v1382_v59 = vpack.c.b16 %v1352_v53, %v1351_v52  ;;  %1623 = vrot.lane.b32.xlu2 %v1606_v56, %s2850_s30  ;;  %v465_v55 = vpop.f32.mrf.mxu0  ;;  %v1694_v49 = vunpack.c.l.b16 %v1214_v44  ;;  %v1693_v52 = vunpack.c.l.b16 %v1213_v48  ;;  %v1183_v58 = vld [vmem:[#allocation2 + $0x7c] sm:$0xff] }
 0x142   : > { %1511 = vrot.lane.b32.xlu1 %v1494_v57, %s2851_s8  ;;  %486 = vst.msk [vmem:[#allocation2 + $0x38] sm:$0xff] %vm478_vm11, %v465_v55  ;;  %v1184_v57 = vld [vmem:[#allocation2 + $0x84] sm:$0xff] }
 0x143   : > { %1399 = vrot.lane.b32.xlu0 %v1382_v59, %s2852_s9  ;;  %2000 = vmatpush.bf16.msrb.mxu0 %v2798_v41  ;;  %v1721_v53 = vpack.c.b16 %v1694_v49, %v1693_v52  ;;  %v1216_v59 = vpack.c.bf16 %v1184_v57, %v1184_v57 }
 0x144   : > { %2819 = vmatpush.bf16.msrb.mxu3 %v2798_v41 }
 0x147   : > { %v607_v37 = vpop.f32.mrf.mxu2  ;;  %2001 = vmatpush.bf16.msrb.mxu0 %v2797_v45 }
 0x148   : > { %628 = vst.msk [vmem:[#allocation2 + $0x98] sm:$0xff] %vm478_vm11, %v607_v37  ;;  %2820 = vmatpush.bf16.msrb.mxu3 %v2797_v45 }
 0x149   : > { %v468_v60 = vpop.f32.mrf.mxu0  ;;  %v1177_v61 = vld [vmem:[#allocation2 + $0x34] sm:$0xff] }
 0x14a   : > { %487 = vst.msk [vmem:[#allocation2 + $0x40] sm:$0xff] %vm478_vm11, %v468_v60  ;;  %v1049_v62 = vld [vmem:[#allocation2 + $0x32] sm:$0xff]  ;;  %v1209_v1 = vpack.c.bf16 %v1177_v61, %v1177_v61  ;;  %v1215_v60 = vpack.c.bf16 %v1183_v58, %v1183_v58  ;;  %v1696_v61 = vunpack.c.l.b16 %v1216_v59 }
 0x14b   : > { %v985_v63 = vld [vmem:[#allocation2 + $0x31] sm:$0xff]  ;;  %v1081_v2 = vpack.c.bf16 %v1049_v62, %v1049_v62  ;;  %2002 = vmatpush.bf16.msrb.mxu0 %v2796_v51 }
 0x14c   : > { %v1017_v3 = vpack.c.bf16 %v985_v63, %v985_v63  ;;  %v1689_v11 = vunpack.c.l.b16 %v1209_v1  ;;  %2821 = vmatpush.bf16.msrb.mxu3 %v2796_v51  ;;  %v1695_v62 = vunpack.c.l.b16 %v1215_v60  ;;  %v1113_v57 = vld [vmem:[#allocation2 + $0x33] sm:$0xff] }
 0x14d   : > { %v1465_v12 = vunpack.c.l.b16 %v1081_v2  ;;  %v917_v2 = vld [vmem:[#allocation2] sm:$0xff] }
 0x14e   : > { %v1353_v15 = vunpack.c.l.b16 %v1017_v3  ;;  %v1722_v63 = vpack.c.b16 %v1696_v61, %v1695_v62  ;;  %v918_v3 = vld [vmem:[#allocation2 + $0x8] sm:$0xff] }
 0x14f   : > { %v610_v0 = vpop.f32.mrf.mxu2 }
 0x150   : > { %629 = vst.msk [vmem:[#allocation2 + $0xa0] sm:$0xff] %vm478_vm11, %v610_v0 }
 0x151   : > { %v470_v4 = vpop.f32.mrf.mxu0  ;;  %v1178_v5 = vld [vmem:[#allocation2 + $0x3c] sm:$0xff] }
 0x152   : > { %v1050_v6 = vld [vmem:[#allocation2 + $0x3a] sm:$0xff]  ;;  %488 = vst.msk [vmem:[#allocation2 + $0x48] sm:$0xff] %vm478_vm11, %v470_v4  ;;  %v1210_v8 = vpack.c.bf16 %v1178_v5, %v1178_v5  ;;  %v949_v4 = vpack.c.bf16 %v917_v2, %v917_v2  ;;  %v950_v5 = vpack.c.bf16 %v918_v3, %v918_v3 }
 0x153   : > { %v986_v7 = vld [vmem:[#allocation2 + $0x39] sm:$0xff]  ;;  %v1082_v9 = vpack.c.bf16 %v1050_v6, %v1050_v6 }
 0x154   : > { %v1018_v10 = vpack.c.bf16 %v986_v7, %v986_v7  ;;  %v1690_v13 = vunpack.c.l.b16 %v1210_v8  ;;  %v1185_v7 = vld [vmem:[#allocation2 + $0x94] sm:$0xff]  ;;  %v1269_v8 = vunpack.c.l.b16 %v949_v4 }
 0x155   : > { %v1466_v14 = vunpack.c.l.b16 %v1082_v9  ;;  %v1270_v9 = vunpack.c.l.b16 %v950_v5  ;;  %v919_v5 = vld [vmem:[#allocation2 + $0x18] sm:$0xff] }
 0x156   : > { %v1354_v16 = vunpack.c.l.b16 %v1018_v10  ;;  %v1719_v17 = vpack.c.b16 %v1690_v13, %v1689_v11  ;;  %v1217_v13 = vpack.c.bf16 %v1185_v7, %v1185_v7 }
 0x157   : > { %v1495_v18 = vpack.c.b16 %v1466_v14, %v1465_v12  ;;  %v612_v20 = vpop.f32.mrf.mxu2  ;;  %v1186_v6 = vld [vmem:[#allocation2 + $0x9c] sm:$0xff]  ;;  %v1301_v14 = vpack.c.b16 %v1270_v9, %v1269_v8 }
 0x158   : > { %v1383_v19 = vpack.c.b16 %v1354_v16, %v1353_v15  ;;  %630 = vst.msk [vmem:[#allocation2 + $0xa8] sm:$0xff] %vm478_vm11, %v612_v20  ;;  %2740 = vmatmul.msk.bf16.gmra.mxu1 %vm478_vm11, %v1719_v17  ;;  %v1218_v10 = vpack.c.bf16 %v1186_v6, %v1186_v6 }
 0x159   : > { %1513 = vrot.lane.b32.xlu2 %v1495_v18, %s2851_s8  ;;  %v473_v21 = vpop.f32.mrf.mxu0 }
 0x15a   : > { %1401 = vrot.lane.b32.xlu0 %v1383_v19, %s2852_s9  ;;  %489 = vst.msk [vmem:[#allocation2 + $0x50] sm:$0xff] %vm478_vm11, %v473_v21  ;;  %v1698_v15 = vunpack.c.l.b16 %v1218_v10 }
 0x15f   : > { %v874_v22 = vpop.f32.mrf.mxu3 }
 0x160   : > { %v615_v24 = vpop.f32.mrf.mxu2  ;;  %905 = vst.msk [vmem:[#allocation2 + $0x120] sm:$0xff] %vm478_vm11, %v874_v22  ;;  %v1697_v22 = vunpack.c.l.b16 %v1217_v13 }
 0x161   : > { %631 = vst.msk [vmem:[#allocation2 + $0xb0] sm:$0xff] %vm478_vm11, %v615_v24  ;;  %v475_v25 = vpop.f32.mrf.mxu0  ;;  %v1179_v27 = vld [vmem:[#allocation2 + $0x4c] sm:$0xff] }
 0x162   : > { %490 = vst.msk [vmem:[#allocation2 + $0x58] sm:$0xff] %vm478_vm11, %v475_v25  ;;  %v1211_v50 = vpack.c.bf16 %v1179_v27, %v1179_v27  ;;  %v987_v49 = vld [vmem:[#allocation2 + $0x49] sm:$0xff] }
 0x164   : > { %v1691_v34 = vunpack.c.l.b16 %v1211_v50 }
 0x167   : > { %v876_v28 = vpop.f32.mrf.mxu3 }
 0x168   : > { %v617_v30 = vpop.f32.mrf.mxu2  ;;  %906 = vst.msk [vmem:[#allocation2 + $0x128] sm:$0xff] %vm478_vm11, %v876_v28  ;;  %v1723_v28 = vpack.c.b16 %v1698_v15, %v1697_v22  ;;  %v1187_v59 = vld [vmem:[#allocation2 + $0xac] sm:$0xff] }
 0x169   : > { %632 = vst.msk [vmem:[#allocation2 + $0xb8] sm:$0xff] %vm478_vm11, %v617_v30  ;;  %v1180_v31 = vld [vmem:[#allocation2 + $0x54] sm:$0xff]  ;;  %v1219_v3 = vpack.c.bf16 %v1187_v59, %v1187_v59 }
 0x16a   : > { %v1212_v33 = vpack.c.bf16 %v1180_v31, %v1180_v31  ;;  %v1052_v38 = vld [vmem:[#allocation2 + $0x52] sm:$0xff] }
 0x16b   : > { %v988_v41 = vld [vmem:[#allocation2 + $0x51] sm:$0xff]  ;;  %v1084_v48 = vpack.c.bf16 %v1052_v38, %v1052_v38  ;;  %v1699_v13 = vunpack.c.l.b16 %v1219_v3 }
 0x16c   : > { %v1692_v35 = vunpack.c.l.b16 %v1212_v33 }
 0x16e   : > { %v1720_v36 = vpack.c.b16 %v1692_v35, %v1691_v34 }
 0x16f   : > { %v879_v40 = vpop.f32.mrf.mxu3 }
 0x170   : > { %v732_v39 = vpop.f32.mrf.mxu2  ;;  %2741 = vmatmul.msk.bf16.gmra.mxu1 %vm478_vm11, %v1720_v36  ;;  %907 = vst.msk [vmem:[#allocation2 + $0x130] sm:$0xff] %vm478_vm11, %v879_v40  ;;  %v1188_v51 = vld [vmem:[#allocation2 + $0xb4] sm:$0xff] }
 0x171   : > { %763 = vst.msk [vmem:[#allocation2 + $0xc0] sm:$0xff] %vm478_vm11, %v732_v39  ;;  %v1220_v60 = vpack.c.bf16 %v1188_v51, %v1188_v51 }
 0x173   : > { %v1700_v8 = vunpack.c.l.b16 %v1220_v60 }
 0x177   : > { %v881_v47 = vpop.f32.mrf.mxu3 }
 0x178   : > { %v734_v46 = vpop.f32.mrf.mxu2  ;;  %908 = vst.msk [vmem:[#allocation2 + $0x138] sm:$0xff] %vm478_vm11, %v881_v47  ;;  %v1051_v47 = vld [vmem:[#allocation2 + $0x4a] sm:$0xff] }
 0x179   : > { %764 = vst.msk [vmem:[#allocation2 + $0xc8] sm:$0xff] %vm478_vm11, %v734_v46  ;;  %v1114_v46 = vld [vmem:[#allocation2 + $0x3b] sm:$0xff] }
 0x17a   : > { %v1146_v58 = vpack.c.bf16 %v1114_v46, %v1114_v46  ;;  %v1054_v46 = vld [vmem:[#allocation2 + $0x6a] sm:$0xff] }
 0x17b   : > { %v1086_v59 = vpack.c.bf16 %v1054_v46, %v1054_v46 }
 0x17c   : > { %v1578_v4 = vunpack.c.l.b16 %v1146_v58  ;;  %v1053_v58 = vld [vmem:[#allocation2 + $0x62] sm:$0xff] }
 0x17d   : > { %v1085_v3 = vpack.c.bf16 %v1053_v58, %v1053_v58 }
 0x17f   : > { %v884_v56 = vpop.f32.mrf.mxu3 }
 0x180   : > { %v737_v54 = vpop.f32.mrf.mxu2  ;;  %2742 = vmatmul.msk.bf16.gmra.mxu1 %vm478_vm11, %v1721_v53  ;;  %909 = vst.msk [vmem:[#allocation2 + $0x140] sm:$0xff] %vm478_vm11, %v884_v56  ;;  %v1020_v56 = vpack.c.bf16 %v988_v41, %v988_v41 }
 0x181   : > { %765 = vst.msk [vmem:[#allocation2 + $0xd0] sm:$0xff] %vm478_vm11, %v737_v54 }
 0x182   : > { %v1356_v2 = vunpack.c.l.b16 %v1020_v56 }
 0x183   : > { %v1622_v23 = vpop.permute.xlu2 %1621 }
 0x187   : > { %v886_v37 = vpop.f32.mrf.mxu3 }
 0x188   : > { %v739_v55 = vpop.f32.mrf.mxu2  ;;  %910 = vst.msk [vmem:[#allocation2 + $0x148] sm:$0xff] %vm478_vm11, %v886_v37  ;;  %v1019_v37 = vpack.c.bf16 %v987_v49, %v987_v49 }
 0x189   : > { %766 = vst.msk [vmem:[#allocation2 + $0xd8] sm:$0xff] %vm478_vm11, %v739_v55  ;;  %v1083_v55 = vpack.c.bf16 %v1051_v47, %v1051_v47  ;;  %v990_v47 = vld [vmem:[#allocation2 + $0x69] sm:$0xff] }
 0x18a   : > { %v1355_v7 = vunpack.c.l.b16 %v1019_v37  ;;  %v1022_v37 = vpack.c.bf16 %v990_v47, %v990_v47  ;;  %v991_v47 = vld [vmem:[#allocation2 + $0x79] sm:$0xff] }
 0x18b   : > { %v1467_v6 = vunpack.c.l.b16 %v1083_v55  ;;  %v989_v55 = vld [vmem:[#allocation2 + $0x61] sm:$0xff] }
 0x18f   : > { %v889_v1 = vpop.f32.mrf.mxu3 }
 0x190   : > { %v742_v0 = vpop.f32.mrf.mxu2  ;;  %2743 = vmatmul.msk.bf16.gmra.mxu1 %vm478_vm11, %v1722_v63  ;;  %911 = vst.msk [vmem:[#allocation2 + $0x150] sm:$0xff] %vm478_vm11, %v889_v1  ;;  %v1145_v63 = vpack.c.bf16 %v1113_v57, %v1113_v57  ;;  %v1468_v1 = vunpack.c.l.b16 %v1084_v48  ;;  %v1116_v57 = vld [vmem:[#allocation2 + $0x53] sm:$0xff] }
 0x191   : > { %767 = vst.msk [vmem:[#allocation2 + $0xe0] sm:$0xff] %vm478_vm11, %v742_v0  ;;  %v920_v0 = vld [vmem:[#allocation2 + $0x20] sm:$0xff] }
 0x192   : > { %v952_v9 = vpack.c.bf16 %v920_v0, %v920_v0  ;;  %v1577_v10 = vunpack.c.l.b16 %v1145_v63  ;;  %v1115_v0 = vld [vmem:[#allocation2 + $0x4b] sm:$0xff] }
 0x194   : > { %v1607_v15 = vpack.c.b16 %v1578_v4, %v1577_v10  ;;  %v1021_v4 = vpack.c.bf16 %v989_v55, %v989_v55  ;;  %v1469_v10 = vunpack.c.l.b16 %v1085_v3 }
 0x197   : > { %v891_v12 = vpop.f32.mrf.mxu3 }
 0x198   : > { %v744_v11 = vpop.f32.mrf.mxu2  ;;  %912 = vst.msk [vmem:[#allocation2 + $0x158] sm:$0xff] %vm478_vm11, %v891_v12  ;;  %v1127_v16 = vld [vmem:[#allocation2 + $0xdb] sm:$0xff]  ;;  %v1384_v12 = vpack.c.b16 %v1356_v2, %v1355_v7  ;;  %v1470_v7 = vunpack.c.l.b16 %v1086_v59  ;;  %v1023_v59 = vpack.c.bf16 %v991_v47, %v991_v47 }
 0x199   : > { %768 = vst.msk [vmem:[#allocation2 + $0xe8] sm:$0xff] %vm478_vm11, %v744_v11  ;;  %v1063_v17 = vld [vmem:[#allocation2 + $0xda] sm:$0xff]  ;;  %v1159_v25 = vpack.c.bf16 %v1127_v16, %v1127_v16  ;;  %v1496_v11 = vpack.c.b16 %v1468_v1, %v1467_v6  ;;  %v1724_v16 = vpack.c.b16 %v1700_v8, %v1699_v13  ;;  %v1148_v1 = vpack.c.bf16 %v1116_v57, %v1116_v57 }
 0x19a   : > { %v999_v20 = vld [vmem:[#allocation2 + $0xd9] sm:$0xff]  ;;  %v1095_v26 = vpack.c.bf16 %v1063_v17, %v1063_v17  ;;  %v1272_v17 = vunpack.c.l.b16 %v952_v9  ;;  %v1147_v6 = vpack.c.bf16 %v1115_v0, %v1115_v0  ;;  %v1358_v8 = vunpack.c.l.b16 %v1022_v37 }
 0x19b   : > { %v1031_v29 = vpack.c.bf16 %v999_v20, %v999_v20  ;;  %v1591_v39 = vunpack.c.l.b16 %v1159_v25  ;;  %v1580_v9 = vunpack.c.l.b16 %v1148_v1  ;;  %v1134_v1 = vld [vmem:[#allocation2 + $0x12b] sm:$0xff]  ;;  %v1359_v3 = vunpack.c.l.b16 %v1023_v59 }
 0x19c   : > { %v1510_v18 = vpop.permute.xlu1 %1509  ;;  %v1479_v40 = vunpack.c.l.b16 %v1095_v26 }
 0x19d   : > { %v1398_v19 = vpop.permute.xlu0 %1397  ;;  %v1367_v44 = vunpack.c.l.b16 %v1031_v29  ;;  %v1624_v29 = vpop.permute.xlu2 %1623 }
 0x19e   : > { %v1735_v21 = vsel %vm478_vm11, %v1301_v14, %v1398_v19  ;;  %v951_v14 = vpack.c.bf16 %v919_v5, %v919_v5 }
 0x19f   : > { %v1783_v24 = vsel %vm1781_vm0, %v1735_v21, %v1510_v18  ;;  %v894_v50 = vpop.f32.mrf.mxu3 }
 0x1a0   : > { %v1816_v27 = vsel %vm1814_vm4, %v1783_v24, %v1622_v23  ;;  %v747_v30 = vpop.f32.mrf.mxu2  ;;  %v1128_v31 = vld [vmem:[#allocation2 + $0xe3] sm:$0xff]  ;;  %2744 = vmatmul.msk.bf16.gmra.mxu1 %vm478_vm11, %v1723_v28  ;;  %913 = vst.msk [vmem:[#allocation2 + $0x160] sm:$0xff] %vm478_vm11, %v894_v50  ;;  %v1271_v20 = vunpack.c.l.b16 %v951_v14  ;;  %v1190_v24 = vld [vmem:[#allocation2 + $0xcc] sm:$0xff]  ;;  %v1497_v14 = vpack.c.b16 %v1470_v7, %v1469_v10 }
 0x1a1   : > { %2003 = vmatmul.bf16.vlgmr.msrb.gmra.mxu0 %v1816_v27  ;;  %v1064_v32 = vld [vmem:[#allocation2 + $0xe2] sm:$0xff]  ;;  %769 = vst.msk [vmem:[#allocation2 + $0xf0] sm:$0xff] %vm478_vm11, %v747_v30  ;;  %v1160_v34 = vpack.c.bf16 %v1128_v31, %v1128_v31 }
 0x1a2   : > { %v1000_v33 = vld [vmem:[#allocation2 + $0xe1] sm:$0xff]  ;;  %v1096_v35 = vpack.c.bf16 %v1064_v32, %v1064_v32  ;;  %v1302_v21 = vpack.c.b16 %v1272_v17, %v1271_v20 }
 0x1a3   : > { %v1032_v36 = vpack.c.bf16 %v1000_v33, %v1000_v33  ;;  %v1592_v42 = vunpack.c.l.b16 %v1160_v34  ;;  %v1189_v32 = vld [vmem:[#allocation2 + $0xc4] sm:$0xff]  ;;  %v1222_v33 = vpack.c.bf16 %v1190_v24, %v1190_v24  ;;  %v1191_v17 = vld [vmem:[#allocation2 + $0xdc] sm:$0xff] }
 0x1a4   : > { %v1480_v43 = vunpack.c.l.b16 %v1096_v35  ;;  %v1192_v13 = vld [vmem:[#allocation2 + $0xe4] sm:$0xff]  ;;  %v1223_v20 = vpack.c.bf16 %v1191_v17, %v1191_v17 }
 0x1a5   : > { %v1368_v45 = vunpack.c.l.b16 %v1032_v36  ;;  %v1614_v52 = vpack.c.b16 %v1592_v42, %v1591_v39  ;;  %v1702_v51 = vunpack.c.l.b16 %v1222_v33 }
 0x1a6   : > { %v1502_v53 = vpack.c.b16 %v1480_v43, %v1479_v40 }
 0x1a7   : > { %v1390_v54 = vpack.c.b16 %v1368_v45, %v1367_v44  ;;  %1639 = vrot.lane.b32.xlu2 %v1614_v52, %s2850_s30  ;;  %v896_v62 = vpop.f32.mrf.mxu3  ;;  %v1221_v45 = vpack.c.bf16 %v1189_v32, %v1189_v32 }
 0x1a8   : > { %1527 = vrot.lane.b32.xlu0 %v1502_v53, %s2851_s8  ;;  %v749_v61 = vpop.f32.mrf.mxu2  ;;  %914 = vst.msk [vmem:[#allocation2 + $0x168] sm:$0xff] %vm478_vm11, %v896_v62 }
 0x1a9   : > { %1415 = vrot.lane.b32.xlu1 %v1390_v54, %s2852_s9  ;;  %770 = vst.msk [vmem:[#allocation2 + $0xf8] sm:$0xff] %vm478_vm11, %v749_v61  ;;  %v1701_v63 = vunpack.c.l.b16 %v1221_v45  ;;  %v1118_v45 = vld [vmem:[#allocation2 + $0x6b] sm:$0xff] }
 0x1aa   : > { %v1150_v57 = vpack.c.bf16 %v1118_v45, %v1118_v45 }
 0x1ab   : > { %v1725_v2 = vpack.c.b16 %v1702_v51, %v1701_v63 }
 0x1ac   : > { %v1582_v0 = vunpack.c.l.b16 %v1150_v57  ;;  %v1008_v57 = vld [vmem:[#allocation2 + $0x141] sm:$0xff] }
 0x1af   : > { %1515 = vrot.lane.b32.xlu2 %v1496_v11, %s2851_s8  ;;  %v899_v19 = vpop.f32.mrf.mxu3  ;;  %v1357_v11 = vunpack.c.l.b16 %v1021_v4 }
 0x1b0   : > { %1403 = vrot.lane.b32.xlu0 %v1384_v12, %s2852_s9  ;;  %v752_v18 = vpop.f32.mrf.mxu2  ;;  %2745 = vmatmul.msk.bf16.gmra.mxu1 %vm478_vm11, %v1724_v16  ;;  %915 = vst.msk [vmem:[#allocation2 + $0x170] sm:$0xff] %vm478_vm11, %v899_v19  ;;  %v1129_v22 = vld [vmem:[#allocation2 + $0xf3] sm:$0xff]  ;;  %v1579_v12 = vunpack.c.l.b16 %v1147_v6 }
 0x1b1   : > { %1625 = vrot.lane.b32.xlu1 %v1607_v15, %s2850_s30  ;;  %771 = vst.msk [vmem:[#allocation2 + $0x100] sm:$0xff] %vm478_vm11, %v752_v18  ;;  %v1065_v23 = vld [vmem:[#allocation2 + $0xf2] sm:$0xff]  ;;  %v1161_v50 = vpack.c.bf16 %v1129_v22, %v1129_v22  ;;  %v1385_v15 = vpack.c.b16 %v1358_v8, %v1357_v11  ;;  %v1224_v18 = vpack.c.bf16 %v1192_v13, %v1192_v13  ;;  %v1133_v8 = vld [vmem:[#allocation2 + $0x123] sm:$0xff] }
 0x1b2   : > { %v1001_v27 = vld [vmem:[#allocation2 + $0xf1] sm:$0xff]  ;;  %v1097_v31 = vpack.c.bf16 %v1065_v23, %v1065_v23  ;;  %v1608_v16 = vpack.c.b16 %v1580_v9, %v1579_v12  ;;  %v1069_v9 = vld [vmem:[#allocation2 + $0x122] sm:$0xff]  ;;  %v1166_v12 = vpack.c.bf16 %v1134_v1, %v1134_v1 }
 0x1b3   : > { %v1033_v35 = vpack.c.bf16 %v1001_v27, %v1001_v27  ;;  %v1593_v48 = vunpack.c.l.b16 %v1161_v50  ;;  %v1193_v58 = vld [vmem:[#allocation2 + $0xf4] sm:$0xff] }
 0x1b4   : > { %v1512_v25 = vpop.permute.xlu1 %1511  ;;  %v1481_v49 = vunpack.c.l.b16 %v1097_v31 }
 0x1b5   : > { %v1400_v26 = vpop.permute.xlu0 %1399  ;;  %v1369_v54 = vunpack.c.l.b16 %v1033_v35  ;;  %v1056_v35 = vld [vmem:[#allocation2 + $0x82] sm:$0xff] }
 0x1b6   : > { %v1738_v28 = vsel %vm478_vm11, %v1302_v21, %v1400_v26  ;;  %v1704_v21 = vunpack.c.l.b16 %v1224_v18  ;;  %v1088_v46 = vpack.c.bf16 %v1056_v35, %v1056_v35  ;;  %v1165_v18 = vpack.c.bf16 %v1133_v8, %v1133_v8 }
 0x1b7   : > { %v1785_v30 = vsel %vm1781_vm0, %v1738_v28, %v1512_v25  ;;  %v901_v38 = vpop.f32.mrf.mxu3  ;;  %v1703_v25 = vunpack.c.l.b16 %v1223_v20 }
 0x1b8   : > { %v1819_v34 = vsel %vm1814_vm4, %v1785_v30, %v1624_v29  ;;  %v754_v36 = vpop.f32.mrf.mxu2  ;;  %v1130_v39 = vld [vmem:[#allocation2 + $0xfb] sm:$0xff]  ;;  %916 = vst.msk [vmem:[#allocation2 + $0x178] sm:$0xff] %vm478_vm11, %v901_v38  ;;  %v1472_v37 = vunpack.c.l.b16 %v1088_v46 }
 0x1b9   : > { %2008 = vmatmul.bf16.gmra.mxu0 %v1819_v34  ;;  %v1066_v40 = vld [vmem:[#allocation2 + $0xfa] sm:$0xff]  ;;  %772 = vst.msk [vmem:[#allocation2 + $0x108] sm:$0xff] %vm478_vm11, %v754_v36  ;;  %v1162_v42 = vpack.c.bf16 %v1130_v39, %v1130_v39  ;;  %v1726_v28 = vpack.c.b16 %v1704_v21, %v1703_v25  ;;  %v1598_v21 = vunpack.c.l.b16 %v1166_v12 }
 0x1ba   : > { %v1002_v41 = vld [vmem:[#allocation2 + $0xf9] sm:$0xff]  ;;  %v1098_v43 = vpack.c.bf16 %v1066_v40, %v1066_v40  ;;  %v992_v39 = vld [vmem:[#allocation2 + $0x81] sm:$0xff] }
 0x1bb   : > { %v1034_v44 = vpack.c.bf16 %v1002_v41, %v1002_v41  ;;  %v1594_v52 = vunpack.c.l.b16 %v1162_v42  ;;  %v994_v25 = vld [vmem:[#allocation2 + $0x99] sm:$0xff] }
 0x1bc   : > { %v1482_v53 = vunpack.c.l.b16 %v1098_v43  ;;  %v1026_v35 = vpack.c.bf16 %v994_v25, %v994_v25  ;;  %v1197_v25 = vld [vmem:[#allocation2 + $0x124] sm:$0xff] }
 0x1bd   : > { %v1370_v56 = vunpack.c.l.b16 %v1034_v44  ;;  %v1615_v60 = vpack.c.b16 %v1594_v52, %v1593_v48  ;;  %v1055_v44 = vld [vmem:[#allocation2 + $0x7a] sm:$0xff] }
 0x1be   : > { %v1503_v61 = vpack.c.b16 %v1482_v53, %v1481_v49  ;;  %v1194_v48 = vld [vmem:[#allocation2 + $0xfc] sm:$0xff]  ;;  %v1024_v53 = vpack.c.bf16 %v992_v39, %v992_v39  ;;  %v1362_v46 = vunpack.c.l.b16 %v1026_v35 }
 0x1bf   : > { %v1391_v62 = vpack.c.b16 %v1370_v56, %v1369_v54  ;;  %1641 = vrot.lane.b32.xlu2 %v1615_v60, %s2850_s30  ;;  %v1117_v54 = vld [vmem:[#allocation2 + $0x63] sm:$0xff]  ;;  %v1087_v56 = vpack.c.bf16 %v1055_v44, %v1055_v44  ;;  %v1226_v55 = vpack.c.bf16 %v1194_v48, %v1194_v48  ;;  %v3208_v48 = vpop.f32.mrf.mxu1  ;;  %v1138_v35 = vld [vmem:[#allocation2 + $0x15b] sm:$0xff] }
 0x1c0   : > { %1529 = vrot.lane.b32.xlu0 %v1503_v61, %s2851_s8  ;;  %v757_v5 = vpop.f32.mrf.mxu2  ;;  %2746 = vmatmul.msk.bf16.gmra.mxu1 %vm478_vm11, %v1725_v2  ;;  %v1149_v60 = vpack.c.bf16 %v1117_v54, %v1117_v54  ;;  %v1360_v61 = vunpack.c.l.b16 %v1024_v53  ;;  %v1070_v2 = vld [vmem:[#allocation2 + $0x12a] sm:$0xff]  ;;  %v1072_v53 = vld [vmem:[#allocation2 + $0x142] sm:$0xff] }
 0x1c1   : > { %1417 = vrot.lane.b32.xlu1 %v1391_v62, %s2852_s9  ;;  %773 = vst.msk [vmem:[#allocation2 + $0x110] sm:$0xff] %vm478_vm11, %v757_v5  ;;  %v1225_v62 = vpack.c.bf16 %v1193_v58, %v1193_v58  ;;  %v1471_v63 = vunpack.c.l.b16 %v1087_v56  ;;  %v1706_v4 = vunpack.c.l.b16 %v1226_v55  ;;  %v1006_v5 = vld [vmem:[#allocation2 + $0x129] sm:$0xff]  ;;  %v1102_v13 = vpack.c.bf16 %v1070_v2, %v1070_v2  ;;  %v1135_v55 = vld [vmem:[#allocation2 + $0x13b] sm:$0xff] }
 0x1c2   : > { %v1581_v7 = vunpack.c.l.b16 %v1149_v60  ;;  %v1386_v10 = vpack.c.b16 %v1360_v61, %v1359_v3  ;;  %v1040_v2 = vpack.c.bf16 %v1008_v57, %v1008_v57 }
 0x1c3   : > { %v1498_v6 = vpack.c.b16 %v1472_v37, %v1471_v63  ;;  %v1705_v11 = vunpack.c.l.b16 %v1225_v62  ;;  %v1071_v37 = vld [vmem:[#allocation2 + $0x13a] sm:$0xff]  ;;  %v1104_v63 = vpack.c.bf16 %v1072_v53, %v1072_v53  ;;  %v1009_v53 = vld [vmem:[#allocation2 + $0x151] sm:$0xff] }
 0x1c5   : > { %v1727_v17 = vpack.c.b16 %v1706_v4, %v1705_v11  ;;  %v1167_v4 = vpack.c.bf16 %v1135_v55, %v1135_v55  ;;  %v1488_v8 = vunpack.c.l.b16 %v1104_v63  ;;  %v996_v11 = vld [vmem:[#allocation2 + $0xb1] sm:$0xff]  ;;  %v1041_v55 = vpack.c.bf16 %v1009_v53, %v1009_v53  ;;  %v998_v63 = vld [vmem:[#allocation2 + $0xc9] sm:$0xff] }
 0x1c7   : > { %1517 = vrot.lane.b32.xlu2 %v1497_v14, %s2851_s8  ;;  %v1005_v14 = vld [vmem:[#allocation2 + $0x121] sm:$0xff]  ;;  %v1599_v12 = vunpack.c.l.b16 %v1167_v4  ;;  %v1377_v4 = vunpack.c.l.b16 %v1041_v55 }
 0x1c8   : > { %1405 = vrot.lane.b32.xlu0 %v1385_v15, %s2852_s9  ;;  %v759_v19 = vpop.f32.mrf.mxu2  ;;  %v1131_v22 = vld [vmem:[#allocation2 + $0x10b] sm:$0xff]  ;;  %v1609_v15 = vpack.c.b16 %v1582_v0, %v1581_v7  ;;  %v1037_v20 = vpack.c.bf16 %v1005_v14, %v1005_v14  ;;  %v1007_v0 = vld [vmem:[#allocation2 + $0x139] sm:$0xff] }
 0x1c9   : > { %1627 = vrot.lane.b32.xlu1 %v1608_v16, %s2850_s30  ;;  %774 = vst.msk [vmem:[#allocation2 + $0x118] sm:$0xff] %vm478_vm11, %v759_v19  ;;  %v1067_v23 = vld [vmem:[#allocation2 + $0x10a] sm:$0xff]  ;;  %v1163_v26 = vpack.c.bf16 %v1131_v22, %v1131_v22  ;;  %v1038_v16 = vpack.c.bf16 %v1006_v5, %v1006_v5  ;;  %v1101_v19 = vpack.c.bf16 %v1069_v9, %v1069_v9  ;;  %v1486_v22 = vunpack.c.l.b16 %v1102_v13  ;;  %v1122_v14 = vld [vmem:[#allocation2 + $0x9b] sm:$0xff] }
 0x1ca   : > { %v1003_v24 = vld [vmem:[#allocation2 + $0x109] sm:$0xff]  ;;  %v1099_v27 = vpack.c.bf16 %v1067_v23, %v1067_v23  ;;  %v1058_v23 = vld [vmem:[#allocation2 + $0x9a] sm:$0xff]  ;;  %v1103_v5 = vpack.c.bf16 %v1071_v37, %v1071_v37  ;;  %v1376_v9 = vunpack.c.l.b16 %v1040_v2 }
 0x1cb   : > { %v1035_v29 = vpack.c.bf16 %v1003_v24, %v1003_v24  ;;  %v1595_v36 = vunpack.c.l.b16 %v1163_v26  ;;  %v1374_v24 = vunpack.c.l.b16 %v1038_v16  ;;  %v1597_v26 = vunpack.c.l.b16 %v1165_v18  ;;  %v995_v18 = vld [vmem:[#allocation2 + $0xa9] sm:$0xff] }
 0x1cc   : > { %v1483_v38 = vunpack.c.l.b16 %v1099_v27  ;;  %v1485_v27 = vunpack.c.l.b16 %v1101_v19  ;;  %v1487_v13 = vunpack.c.l.b16 %v1103_v5  ;;  %v1198_v19 = vld [vmem:[#allocation2 + $0x12c] sm:$0xff]  ;;  %v1061_v2 = vld [vmem:[#allocation2 + $0xc2] sm:$0xff]  ;;  %v1402_v53 = vpop.permute.xlu0 %1401 }
 0x1cd   : > { %v1371_v42 = vunpack.c.l.b16 %v1035_v29  ;;  %v1120_v29 = vld [vmem:[#allocation2 + $0x83] sm:$0xff] }
 0x1d0   : > { %v1132_v30 = vld [vmem:[#allocation2 + $0x113] sm:$0xff]  ;;  %2747 = vmatmul.msk.bf16.gmra.mxu1 %vm478_vm11, %v1726_v28 }
 0x1d1   : > { %v1068_v50 = vld [vmem:[#allocation2 + $0x112] sm:$0xff]  ;;  %v1164_v32 = vpack.c.bf16 %v1132_v30, %v1132_v30  ;;  %v1373_v30 = vunpack.c.l.b16 %v1037_v20 }
 0x1d2   : > { %v1004_v31 = vld [vmem:[#allocation2 + $0x111] sm:$0xff]  ;;  %v1100_v33 = vpack.c.bf16 %v1068_v50, %v1068_v50  ;;  %v1090_v50 = vpack.c.bf16 %v1058_v23, %v1058_v23  ;;  %v1028_v23 = vpack.c.bf16 %v996_v11, %v996_v11 }
 0x1d3   : > { %v1036_v34 = vpack.c.bf16 %v1004_v31, %v1004_v31  ;;  %v1596_v40 = vunpack.c.l.b16 %v1164_v32  ;;  %v1057_v28 = vld [vmem:[#allocation2 + $0x92] sm:$0xff] }
 0x1d4   : > { %v1484_v41 = vunpack.c.l.b16 %v1100_v33  ;;  %v993_v31 = vld [vmem:[#allocation2 + $0x91] sm:$0xff]  ;;  %v1617_v33 = vpack.c.b16 %v1598_v21, %v1597_v26  ;;  %v1089_v39 = vpack.c.bf16 %v1057_v28, %v1057_v28  ;;  %v1474_v44 = vunpack.c.l.b16 %v1090_v50 }
 0x1d5   : > { %v1372_v43 = vunpack.c.l.b16 %v1036_v34  ;;  %v1616_v49 = vpack.c.b16 %v1596_v40, %v1595_v36  ;;  %v1196_v32 = vld [vmem:[#allocation2 + $0x114] sm:$0xff]  ;;  %v1505_v34 = vpack.c.b16 %v1486_v22, %v1485_v27  ;;  %v1152_v40 = vpack.c.bf16 %v1120_v29, %v1120_v29  ;;  %v1123_v11 = vld [vmem:[#allocation2 + $0xab] sm:$0xff] }
 0x1d6   : > { %v1504_v51 = vpack.c.b16 %v1484_v41, %v1483_v38  ;;  %v1119_v36 = vld [vmem:[#allocation2 + $0x7b] sm:$0xff]  ;;  %v1393_v38 = vpack.c.b16 %v1374_v24, %v1373_v30  ;;  %v1195_v41 = vld [vmem:[#allocation2 + $0x10c] sm:$0xff]  ;;  %v1506_v21 = vpack.c.b16 %v1488_v8, %v1487_v13  ;;  %v1154_v27 = vpack.c.bf16 %v1122_v14, %v1122_v14 }
 0x1d7   : > { %v1392_v52 = vpack.c.b16 %v1372_v43, %v1371_v42  ;;  %1643 = vrot.lane.b32.xlu2 %v1616_v49, %s2850_s30  ;;  %v1025_v42 = vpack.c.bf16 %v993_v31, %v993_v31  ;;  %v1228_v43 = vpack.c.bf16 %v1196_v32, %v1196_v32  ;;  %v1151_v45 = vpack.c.bf16 %v1119_v36, %v1119_v36  ;;  %v1121_v24 = vld [vmem:[#allocation2 + $0x93] sm:$0xff] }
 0x1d8   : > { %1531 = vrot.lane.b32.xlu0 %v1504_v51, %s2851_s8  ;;  %v1227_v47 = vpack.c.bf16 %v1195_v41, %v1195_v41  ;;  %v1473_v49 = vunpack.c.l.b16 %v1089_v39  ;;  %v1584_v51 = vunpack.c.l.b16 %v1152_v40  ;;  %v1027_v29 = vpack.c.bf16 %v995_v18, %v995_v18  ;;  %v1074_v36 = vld [vmem:[#allocation2 + $0x15a] sm:$0xff] }
 0x1d9   : > { %1419 = vrot.lane.b32.xlu1 %v1392_v52, %s2852_s9  ;;  %v1136_v52 = vld [vmem:[#allocation2 + $0x143] sm:$0xff]  ;;  %v1361_v54 = vunpack.c.l.b16 %v1025_v42  ;;  %v1708_v56 = vunpack.c.l.b16 %v1228_v43  ;;  %v1583_v59 = vunpack.c.l.b16 %v1151_v45  ;;  %v1230_v30 = vpack.c.bf16 %v1198_v19, %v1198_v19  ;;  %v1010_v41 = vld [vmem:[#allocation2 + $0x159] sm:$0xff] }
 0x1da   : > { %v1499_v58 = vpack.c.b16 %v1474_v44, %v1473_v49  ;;  %v1707_v61 = vunpack.c.l.b16 %v1227_v47  ;;  %v1168_v62 = vpack.c.bf16 %v1136_v52, %v1136_v52  ;;  %v1153_v50 = vpack.c.bf16 %v1121_v24, %v1121_v24  ;;  %v1137_v45 = vld [vmem:[#allocation2 + $0x153] sm:$0xff] }
 0x1db   : > { %v1387_v60 = vpack.c.b16 %v1362_v46, %v1361_v54  ;;  %v1610_v1 = vpack.c.b16 %v1584_v51, %v1583_v59  ;;  %v1229_v31 = vpack.c.bf16 %v1197_v25, %v1197_v25  ;;  %v1363_v39 = vunpack.c.l.b16 %v1027_v29  ;;  %v1073_v46 = vld [vmem:[#allocation2 + $0x152] sm:$0xff] }
 0x1dc   : > { %v1728_v3 = vpack.c.b16 %v1708_v56, %v1707_v61  ;;  %v1600_v7 = vunpack.c.l.b16 %v1168_v62  ;;  %v1710_v40 = vunpack.c.l.b16 %v1230_v30  ;;  %v1585_v43 = vunpack.c.l.b16 %v1153_v50  ;;  %v1062_v61 = vld [vmem:[#allocation2 + $0xca] sm:$0xff] }
 0x1dd   : > { %v1709_v44 = vunpack.c.l.b16 %v1229_v31  ;;  %v1170_v51 = vpack.c.bf16 %v1138_v35, %v1138_v35  ;;  %v1106_v52 = vpack.c.bf16 %v1074_v36, %v1074_v36  ;;  %v1042_v56 = vpack.c.bf16 %v1010_v41, %v1010_v41  ;;  %v1012_v30 = vld [vmem:[#allocation2 + $0x171] sm:$0xff] }
 0x1de   : > { %v1618_v20 = vpack.c.b16 %v1600_v7, %v1599_v12  ;;  %v1105_v59 = vpack.c.bf16 %v1073_v46, %v1073_v46  ;;  %v1094_v5 = vpack.c.bf16 %v1062_v61, %v1062_v61  ;;  %v1200_v7 = vld [vmem:[#allocation2 + $0x144] sm:$0xff]  ;;  %v1093_v14 = vpack.c.bf16 %v1061_v2, %v1061_v2 }
 0x1df   : > { %1519 = vrot.lane.b32.xlu2 %v1498_v6, %s2851_s8  ;;  %v1039_v6 = vpack.c.bf16 %v1007_v0, %v1007_v0  ;;  %v1729_v57 = vpack.c.b16 %v1710_v40, %v1709_v44  ;;  %v1602_v37 = vunpack.c.l.b16 %v1170_v51  ;;  %v1378_v62 = vunpack.c.l.b16 %v1042_v56  ;;  %v936_v44 = vld [vmem:[#allocation2 + $0xe0] sm:$0xff]  ;;  %v1126_v61 = vld [vmem:[#allocation2 + $0xcb] sm:$0xff] }
 0x1e0   : > { %1407 = vrot.lane.b32.xlu0 %v1386_v10, %s2852_s9  ;;  %2748 = vmatmul.msk.bf16.gmra.mxu1 %vm478_vm11, %v1727_v17  ;;  %v1060_v10 = vld [vmem:[#allocation2 + $0xb2] sm:$0xff]  ;;  %v1059_v17 = vld [vmem:[#allocation2 + $0xaa] sm:$0xff]  ;;  %v1232_v19 = vpack.c.bf16 %v1200_v7, %v1200_v7  ;;  %v1477_v24 = vunpack.c.l.b16 %v1093_v14  ;;  %v1158_v7 = vpack.c.bf16 %v1126_v61, %v1126_v61 }
 0x1e1   : > { %1629 = vrot.lane.b32.xlu1 %v1609_v15, %s2850_s30  ;;  %v3214_v15 = vpop.f32.mrf.mxu1  ;;  %v1375_v16 = vunpack.c.l.b16 %v1039_v6  ;;  %v1092_v22 = vpack.c.bf16 %v1060_v10, %v1060_v10  ;;  %v1091_v28 = vpack.c.bf16 %v1059_v17, %v1059_v17  ;;  %v997_v6 = vld [vmem:[#allocation2 + $0xc1] sm:$0xff]  ;;  %v1030_v10 = vpack.c.bf16 %v998_v63, %v998_v63  ;;  %v924_v61 = vld [vmem:[#allocation2 + $0x50] sm:$0xff] }
 0x1e2   : > { %v1395_v13 = vpack.c.b16 %v1378_v62, %v1377_v4  ;;  %v1199_v17 = vld [vmem:[#allocation2 + $0x13c] sm:$0xff]  ;;  %v1029_v18 = vpack.c.bf16 %v997_v6, %v997_v6  ;;  %v1712_v29 = vunpack.c.l.b16 %v1232_v19  ;;  %v921_v62 = vld [vmem:[#allocation2 + $0x30] sm:$0xff] }
 0x1e3   : > { %v1394_v26 = vpack.c.b16 %v1376_v9, %v1375_v16  ;;  %v1476_v32 = vunpack.c.l.b16 %v1092_v22  ;;  %v1366_v22 = vunpack.c.l.b16 %v1030_v10 }
 0x1e7   : > { %1645 = vrot.lane.b32.xlu2 %v1617_v33, %s2850_s30  ;;  %v1364_v33 = vunpack.c.l.b16 %v1028_v23  ;;  %v1231_v23 = vpack.c.bf16 %v1199_v17, %v1199_v17 }
 0x1e8   : > { %1533 = vrot.lane.b32.xlu0 %v1505_v34, %s2851_s8  ;;  %v1586_v34 = vunpack.c.l.b16 %v1154_v27  ;;  %v1076_v27 = vld [vmem:[#allocation2 + $0x172] sm:$0xff] }
 0x1e9   : > { %1421 = vrot.lane.b32.xlu1 %v1393_v38, %s2852_s9  ;;  %v1475_v38 = vunpack.c.l.b16 %v1091_v28  ;;  %v3219_v42 = vpop.f32.mrf.mxu1  ;;  %v1388_v49 = vpack.c.b16 %v1364_v33, %v1363_v39  ;;  %v1365_v28 = vunpack.c.l.b16 %v1029_v18  ;;  %v1075_v33 = vld [vmem:[#allocation2 + $0x16a] sm:$0xff]  ;;  %v1711_v35 = vunpack.c.l.b16 %v1231_v23 }
 0x1ea   : > { %v1611_v54 = vpack.c.b16 %v1586_v34, %v1585_v43  ;;  %v1011_v39 = vld [vmem:[#allocation2 + $0x169] sm:$0xff]  ;;  %v1044_v43 = vpack.c.bf16 %v1012_v30, %v1012_v30 }
 0x1eb   : > { %v1500_v47 = vpack.c.b16 %v1476_v32, %v1475_v38  ;;  %v1139_v32 = vld [vmem:[#allocation2 + $0x16b] sm:$0xff]  ;;  %v1389_v34 = vpack.c.b16 %v1366_v22, %v1365_v28  ;;  %v1108_v38 = vpack.c.bf16 %v1076_v27, %v1076_v27  ;;  %v1043_v51 = vpack.c.bf16 %v1011_v39, %v1011_v39 }
 0x1ec   : > { %v1171_v46 = vpack.c.bf16 %v1139_v32, %v1139_v32  ;;  %v1590_v22 = vunpack.c.l.b16 %v1158_v7 }
 0x1ed   : > { %v1492_v56 = vunpack.c.l.b16 %v1108_v38  ;;  %v1379_v63 = vunpack.c.l.b16 %v1043_v51  ;;  %v938_v51 = vld [vmem:[#allocation2 + $0xf8] sm:$0xff] }
 0x1ee   : > { %v1603_v55 = vunpack.c.l.b16 %v1171_v46 }
 0x1ef   : > { %1521 = vrot.lane.b32.xlu2 %v1499_v58, %s2851_s8  ;;  %v1169_v58 = vpack.c.bf16 %v1137_v45, %v1137_v45  ;;  %v1730_v45 = vpack.c.b16 %v1712_v29, %v1711_v35 }
 0x1f0   : > { %1409 = vrot.lane.b32.xlu0 %v1387_v60, %s2852_s9  ;;  %2749 = vmatmul.msk.bf16.gmra.mxu1 %vm478_vm11, %v1728_v3  ;;  %v1490_v60 = vunpack.c.l.b16 %v1106_v52  ;;  %v1124_v3 = vld [vmem:[#allocation2 + $0xb3] sm:$0xff] }
 0x1f1   : > { %1631 = vrot.lane.b32.xlu1 %v1610_v1, %s2850_s30  ;;  %v1601_v0 = vunpack.c.l.b16 %v1169_v58  ;;  %v1489_v1 = vunpack.c.l.b16 %v1105_v59  ;;  %v3225_v12 = vpop.f32.mrf.mxu1  ;;  %v1156_v16 = vpack.c.bf16 %v1124_v3, %v1124_v3  ;;  %v935_v52 = vld [vmem:[#allocation2 + $0xd8] sm:$0xff]  ;;  %v1380_v59 = vunpack.c.l.b16 %v1044_v43 }
 0x1f2   : > { %v922_v58 = vld [vmem:[#allocation2 + $0x38] sm:$0xff] }
 0x1f3   : > { %v1619_v8 = vpack.c.b16 %v1602_v37, %v1601_v0  ;;  %v1507_v9 = vpack.c.b16 %v1490_v60, %v1489_v1  ;;  %v1588_v25 = vunpack.c.l.b16 %v1156_v16  ;;  %v967_v60 = vpack.c.bf16 %v935_v52, %v935_v52  ;;  %v1202_v0 = vld [vmem:[#allocation2 + $0x15c] sm:$0xff]  ;;  %v1203_v52 = vld [vmem:[#allocation2 + $0x16c] sm:$0xff] }
 0x1f4   : > { %v954_v1 = vpack.c.bf16 %v922_v58, %v922_v58  ;;  %v1396_v6 = vpack.c.b16 %v1380_v59, %v1379_v63  ;;  %v970_v59 = vpack.c.bf16 %v938_v51, %v938_v51  ;;  %v926_v51 = vld [vmem:[#allocation2 + $0x68] sm:$0xff] }
 0x1f5   : > { %v1287_v10 = vunpack.c.l.b16 %v967_v60 }
 0x1f6   : > { %v1274_v17 = vunpack.c.l.b16 %v954_v1  ;;  %v923_v1 = vld [vmem:[#allocation2 + $0x48] sm:$0xff] }
 0x1f7   : > { %1647 = vrot.lane.b32.xlu2 %v1618_v20, %s2850_s30  ;;  %v1478_v20 = vunpack.c.l.b16 %v1094_v5  ;;  %v1125_v5 = vld [vmem:[#allocation2 + $0xc3] sm:$0xff]  ;;  %v955_v7 = vpack.c.bf16 %v923_v1, %v923_v1 }
 0x1f8   : > { %1535 = vrot.lane.b32.xlu0 %v1506_v21, %s2851_s8  ;;  %v1155_v21 = vpack.c.bf16 %v1123_v11, %v1123_v11  ;;  %v1234_v11 = vpack.c.bf16 %v1202_v0, %v1202_v0  ;;  %v1157_v16 = vpack.c.bf16 %v1125_v5, %v1125_v5 }
 0x1f9   : > { %1423 = vrot.lane.b32.xlu1 %v1394_v26, %s2852_s9  ;;  %v1140_v26 = vld [vmem:[#allocation2 + $0x173] sm:$0xff]  ;;  %v1501_v50 = vpack.c.b16 %v1478_v20, %v1477_v24  ;;  %v3230_v40 = vpop.f32.mrf.mxu1 }
 0x1fa   : > { %v1587_v31 = vunpack.c.l.b16 %v1155_v21  ;;  %v1172_v36 = vpack.c.bf16 %v1140_v26, %v1140_v26  ;;  %v3245_v26 = vld [vmem:[%s3482_s3] ss:$0 sm:$0xff]  ;;  %v1589_v28 = vunpack.c.l.b16 %v1157_v16 }
 0x1fc   : > { %v1612_v41 = vpack.c.b16 %v1588_v25, %v1587_v31  ;;  %v1714_v25 = vunpack.c.l.b16 %v1234_v11  ;;  %v1613_v32 = vpack.c.b16 %v1590_v22, %v1589_v28 }
 0x1ff   : > { %1523 = vrot.lane.b32.xlu2 %v1500_v47, %s2851_s8  ;;  %v1107_v47 = vpack.c.bf16 %v1075_v33, %v1075_v33 }
 0x200   : > { %1411 = vrot.lane.b32.xlu0 %v1388_v49, %s2852_s9  ;;  %2750 = vmatmul.msk.bf16.gmra.mxu1 %vm478_vm11, %v1729_v57  ;;  %v1514_v49 = vpop.permute.xlu2 %1513  ;;  %v968_v57 = vpack.c.bf16 %v936_v44, %v936_v44 }
 0x201   : > { %1633 = vrot.lane.b32.xlu1 %v1611_v54, %s2850_s30  ;;  %v1604_v54 = vunpack.c.l.b16 %v1172_v36  ;;  %v1491_v37 = vunpack.c.l.b16 %v1107_v47 }
 0x202   : > { %v1288_v4 = vunpack.c.l.b16 %v968_v57  ;;  %v937_v57 = vld [vmem:[#allocation2 + $0xf0] sm:$0xff] }
 0x203   : > { %v1620_v2 = vpack.c.b16 %v1604_v54, %v1603_v55  ;;  %v1508_v3 = vpack.c.b16 %v1492_v56, %v1491_v37  ;;  %v1235_v55 = vpack.c.bf16 %v1203_v52, %v1203_v52 }
 0x204   : > { %v1310_v19 = vpack.c.b16 %v1288_v4, %v1287_v10  ;;  %v1290_v4 = vunpack.c.l.b16 %v970_v59 }
 0x205   : > { %v1715_v5 = vunpack.c.l.b16 %v1235_v55 }
 0x207   : > { %1649 = vrot.lane.b32.xlu2 %v1619_v8, %s2850_s30  ;;  %v1201_v8 = vld [vmem:[#allocation2 + $0x154] sm:$0xff] }
 0x208   : > { %1537 = vrot.lane.b32.xlu0 %v1507_v9, %s2851_s8  ;;  %v953_v9 = vpack.c.bf16 %v921_v62, %v921_v62  ;;  %v1640_v14 = vpop.permute.xlu2 %1639  ;;  %v1233_v20 = vpack.c.bf16 %v1201_v8, %v1201_v8 }
 0x209   : > { %1425 = vrot.lane.b32.xlu1 %v1395_v13, %s2852_s9  ;;  %v3238_v13 = vpop.f32.mrf.mxu1 }
 0x20a   : > { %v1273_v23 = vunpack.c.l.b16 %v953_v9  ;;  %v1713_v31 = vunpack.c.l.b16 %v1233_v20 }
 0x20c   : > { %v1303_v29 = vpack.c.b16 %v1274_v17, %v1273_v23  ;;  %v1275_v17 = vunpack.c.l.b16 %v955_v7 }
 0x20e   : > { %v1741_v33 = vsel %vm478_vm11, %v1303_v29, %v1402_v53 }
 0x20f   : > { %1525 = vrot.lane.b32.xlu2 %v1501_v50, %s2851_s8 }
 0x210   : > { %1413 = vrot.lane.b32.xlu0 %v1389_v34, %s2852_s9  ;;  %2751 = vmatmul.msk.bf16.gmra.mxu1 %vm478_vm11, %v1730_v45  ;;  %v1731_v34 = vpack.c.b16 %v1714_v25, %v1713_v31  ;;  %v1516_v38 = vpop.permute.xlu2 %1515  ;;  %v1204_v45 = vld [vmem:[#allocation2 + $0x174] sm:$0xff] }
 0x211   : > { %1635 = vrot.lane.b32.xlu1 %v1612_v41, %s2850_s30  ;;  %v3250_v35 = vpop.f32.mrf.mxu1  ;;  %v1787_v41 = vsel %vm1781_vm0, %v1741_v33, %v1514_v49  ;;  %v1236_v53 = vpack.c.bf16 %v1204_v45, %v1204_v45  ;;  %v3263_v49 = vld [vmem:[%s3483_s4] sm:$0xff]  ;;  %v939_v45 = vld [vmem:[#allocation2 + $0x108] sm:$0xff] }
 0x213   : > { %v1716_v63 = vunpack.c.l.b16 %v1236_v53  ;;  %v971_v53 = vpack.c.bf16 %v939_v45, %v939_v45 }
 0x215   : > { %v1732_v9 = vpack.c.b16 %v1716_v63, %v1715_v5 }
 0x217   : > { %1651 = vrot.lane.b32.xlu2 %v1620_v2, %s2850_s30 }
 0x218   : > { %1539 = vrot.lane.b32.xlu0 %v1508_v3, %s2851_s8  ;;  %v956_v3 = vpack.c.bf16 %v924_v61, %v924_v61 }
 0x219   : > { %1427 = vrot.lane.b32.xlu1 %v1396_v6, %s2852_s9  ;;  %v3270_v37 = vpop.f32.mrf.mxu1  ;;  %v1642_v60 = vpop.permute.xlu2 %1641 }
 0x21a   : > { %v1528_v18 = vpop.permute.xlu0 %1527  ;;  %v1276_v10 = vunpack.c.l.b16 %v956_v3 }
 0x21b   : > { %v1416_v21 = vpop.permute.xlu1 %1415 }
 0x21c   : > { %v1762_v24 = vsel %vm478_vm11, %v1310_v19, %v1416_v21  ;;  %v1304_v22 = vpack.c.b16 %v1276_v10, %v1275_v17 }
 0x21d   : > { %v1801_v27 = vsel %vm1781_vm0, %v1762_v24, %v1528_v18 }
 0x21e   : > { %v2004_v30 = vpop.f32.mrf.mxu0  ;;  %v1843_v50 = vsel %vm1814_vm4, %v1801_v27, %v1640_v14 }
 0x21f   : > { %2048 = vmatmul.bf16.vlgmr.msrb.gmra.mxu3 %v1843_v50  ;;  %v2005_v36 = vadd.f32 %v3245_v26, %v2004_v30 }
 0x220   : > { %2752 = vmatmul.msk.bf16.gmra.mxu1 %vm478_vm11, %v1731_v34 }
 0x221   : > { %1637 = vrot.lane.b32.xlu1 %v1613_v32, %s2850_s30  ;;  %v2094_v44 = vadd.f32 %v3208_v48, %v2005_v36  ;;  %v3268_v48 = vld [vmem:[%s3483_s4 + $0x8] sm:$0xff]  ;;  %v3276_v19 = vpop.f32.mrf.mxu1  ;;  %v3278_v20 = vpop.permute.xlu2 %1517  ;;  %s2569_s30 = sshll.u32 %s3498_s29, 3 }
 0x222   : > { %v1404_v58 = vpop.permute.xlu0 %1403  ;;  %s280_s12 = scalar_lea.vmem %s3486_s7, %s2569_s30 }
 0x223   : > { %v1626_v39 = vpop.permute.xlu1 %1625  ;;  %v2173_v54 = vmax.f32 %v2094_v44, 0.0  ;;  %v1744_v25 = vsel %vm478_vm11, %v1304_v22, %v1404_v58  ;;  %v941_v22 = vld [vmem:[#allocation2 + $0x120] sm:$0xff] }
 0x224   : > { %v1822_v43 = vsel %vm1814_vm4, %v1787_v41, %v1626_v39  ;;  %v1789_v30 = vsel %vm1781_vm0, %v1744_v25, %v1516_v38  ;;  %v940_v41 = vld [vmem:[#allocation2 + $0x110] sm:$0xff] }
 0x225   : > { %2013 = vmatmul.bf16.gmra.mxu0 %v1822_v43  ;;  %v2207_v0 = vmul.f32 %v3263_v49, %v2173_v54  ;;  %v925_v54 = vld [vmem:[#allocation2 + $0x60] sm:$0xff] }
 0x226   : > { %v2006_v46 = vpop.f32.mrf.mxu0  ;;  %v957_v61 = vpack.c.bf16 %v925_v54, %v925_v54 }
 0x227   : > { %v2007_v47 = vadd.f32 %v3245_v26, %v2006_v46 }
 0x228   : > { %v1277_v5 = vunpack.c.l.b16 %v957_v61 }
 0x229   : > { %v2096_v56 = vadd.f32 %v3214_v15, %v2007_v47  ;;  %v969_v15 = vpack.c.bf16 %v937_v57, %v937_v57  ;;  %v3287_v34 = vpop.f32.mrf.mxu1  ;;  %v972_v47 = vpack.c.bf16 %v940_v41, %v940_v41  ;;  %v958_v57 = vpack.c.bf16 %v926_v51, %v926_v51 }
 0x22b   : > { %v2174_v62 = vmax.f32 %v2096_v56, 0.0  ;;  %v1289_v8 = vunpack.c.l.b16 %v969_v15  ;;  %v1292_v58 = vunpack.c.l.b16 %v972_v47  ;;  %v1278_v63 = vunpack.c.l.b16 %v958_v57 }
 0x22d   : > { %v2208_v2 = vmul.f32 %v3268_v48, %v2174_v62  ;;  %v1311_v14 = vpack.c.b16 %v1290_v4, %v1289_v8 }
 0x22f   : > { %v2239_v6 = vmax.f32 %v2207_v0, %v2208_v2 }
 0x230   : > { %2753 = vmatmul.msk.bf16.gmra.mxu1 %vm478_vm11, %v1732_v9  ;;  %v1305_v9 = vpack.c.b16 %v1278_v63, %v1277_v5 }
 0x231   : > { %v2240_v28 = vrot.slane %v2239_v6, 4  ;;  %v1644_v31 = vpop.permute.xlu2 %1643  ;;  %v3295_v62 = vpop.f32.mrf.mxu1 }
 0x232   : > { %v1530_v11 = vpop.permute.xlu0 %1529 }
 0x233   : > { %v1418_v16 = vpop.permute.xlu1 %1417  ;;  %v2241_v36 = vmax.f32 %v2239_v6, %v2240_v28 }
 0x234   : > { %v1765_v18 = vsel %vm478_vm11, %v1311_v14, %v1418_v16  ;;  %v942_v16 = vld [vmem:[#allocation2 + $0x128] sm:$0xff] }
 0x235   : > { %v1803_v21 = vsel %vm1781_vm0, %v1765_v18, %v1530_v11  ;;  %v2242_v38 = vrot.slane %v2241_v36, 2 }
 0x236   : > { %v2009_v23 = vpop.f32.mrf.mxu0  ;;  %v1846_v24 = vsel %vm1814_vm4, %v1803_v21, %v1642_v60 }
 0x237   : > { %2053 = vmatmul.bf16.gmra.mxu3 %v1846_v24  ;;  %v2010_v27 = vadd.f32 %v3245_v26, %v2009_v23  ;;  %v2243_v59 = vmax.f32 %v2241_v36, %v2242_v38  ;;  %v974_v24 = vpack.c.bf16 %v942_v16, %v942_v16  ;;  %v927_v36 = vld [vmem:[#allocation2 + $0x78] sm:$0xff] }
 0x238   : > { %v959_v45 = vpack.c.bf16 %v927_v36, %v927_v36 }
 0x239   : > { %v2099_v32 = vadd.f32 %v3219_v42, %v2010_v27  ;;  %v3293_v55 = vpop.permute.xlu2 %1519  ;;  %v2244_v2 = vrot.slane %v2243_v59, 1  ;;  %v3301_v25 = vpop.f32.mrf.mxu1  ;;  %v1294_v41 = vunpack.c.l.b16 %v974_v24 }
 0x23a   : > { %v1406_v46 = vpop.permute.xlu0 %1405 }
 0x23b   : > { %v1628_v29 = vpop.permute.xlu1 %1627  ;;  %v2175_v43 = vmax.f32 %v2099_v32, 0.0  ;;  %v2245_v11 = vmax.f32 %v2243_v59, %v2244_v2  ;;  %v1747_v17 = vsel %vm478_vm11, %v1305_v9, %v1406_v46  ;;  %v973_v32 = vpack.c.bf16 %v941_v22, %v941_v22 }
 0x23c   : > { %v1825_v50 = vsel %vm1814_vm4, %v1789_v30, %v1628_v29  ;;  %v928_v29 = vld [vmem:[#allocation2 + $0x80] sm:$0xff] }
 0x23d   : > { %2018 = vmatmul.bf16.gmra.mxu0 %v1825_v50  ;;  %v2209_v42 = vmul.f32 %v3263_v49, %v2175_v43  ;;  %v2351_v27 = vpack.c.bf16 %v2245_v11, %v2245_v11  ;;  %v1791_v50 = vsel %vm1781_vm0, %v1747_v17, %v3278_v20  ;;  %v1293_v46 = vunpack.c.l.b16 %v973_v32 }
 0x23e   : > { %v2011_v33 = vpop.f32.mrf.mxu0 }
 0x23f   : > { %v2012_v39 = vadd.f32 %v3245_v26, %v2011_v33  ;;  %v2403_v43 = vunpack.c.l.b16 %v2351_v27 }
 0x241   : > { %v2101_v44 = vadd.f32 %v3225_v12, %v2012_v39  ;;  %v1291_v12 = vunpack.c.l.b16 %v971_v53  ;;  %v1646_v21 = vpop.permute.xlu2 %1645  ;;  %v960_v39 = vpack.c.bf16 %v928_v29, %v928_v29 }
 0x243   : > { %v2176_v52 = vmax.f32 %v2101_v44, 0.0  ;;  %v1312_v1 = vpack.c.b16 %v1292_v58, %v1291_v12  ;;  %v1280_v38 = vunpack.c.l.b16 %v960_v39  ;;  %v943_v12 = vld [vmem:[#allocation2 + $0x138] sm:$0xff] }
 0x245   : > { %v2210_v56 = vmul.f32 %v3268_v48, %v2176_v52  ;;  %v1313_v52 = vpack.c.b16 %v1294_v41, %v1293_v46 }
 0x247   : > { %v2246_v60 = vmax.f32 %v2209_v42, %v2210_v56  ;;  %v1279_v42 = vunpack.c.l.b16 %v959_v45  ;;  %v3310_v56 = vpop.f32.mrf.mxu1 }
 0x249   : > { %v2247_v15 = vrot.slane %v2246_v60, 4  ;;  %v1522_v20 = vpop.permute.xlu2 %1521  ;;  %v1306_v58 = vpack.c.b16 %v1280_v38, %v1279_v42 }
 0x24a   : > { %v1532_v0 = vpop.permute.xlu0 %1531 }
 0x24b   : > { %v2248_v3 = vmax.f32 %v2246_v60, %v2247_v15  ;;  %v1420_v4 = vpop.permute.xlu1 %1419  ;;  %v944_v60 = vld [vmem:[#allocation2 + $0x140] sm:$0xff] }
 0x24c   : > { %v1768_v6 = vsel %vm478_vm11, %v1312_v1, %v1420_v4  ;;  %v976_v63 = vpack.c.bf16 %v944_v60, %v944_v60  ;;  %v975_v4 = vpack.c.bf16 %v943_v12, %v943_v12 }
 0x24d   : > { %v2249_v7 = vrot.slane %v2248_v3, 2  ;;  %v1805_v8 = vsel %vm1781_vm0, %v1768_v6, %v1532_v0  ;;  %v930_v0 = vld [vmem:[#allocation2 + $0x98] sm:$0xff]  ;;  %v929_v6 = vld [vmem:[#allocation2 + $0x90] sm:$0xff] }
 0x24e   : > { %v1849_v10 = vsel %vm1814_vm4, %v1805_v8, %v1644_v31  ;;  %v1296_v8 = vunpack.c.l.b16 %v976_v63  ;;  %v1295_v11 = vunpack.c.l.b16 %v975_v4  ;;  %v934_v4 = vld [vmem:[#allocation2 + $0xc8] sm:$0xff] }
 0x24f   : > { %v2250_v14 = vmax.f32 %v2248_v3, %v2249_v7  ;;  %2058 = vmatmul.bf16.gmra.mxu3 %v1849_v10  ;;  %v962_v7 = vpack.c.bf16 %v930_v0, %v930_v0  ;;  %v3318_v9 = vpop.f32.mrf.mxu1  ;;  %v961_v10 = vpack.c.bf16 %v929_v6, %v929_v6  ;;  %v947_v0 = vld [vmem:[#allocation2 + $0x168] sm:$0xff] }
 0x250   : > { %v1314_v17 = vpack.c.b16 %v1296_v8, %v1295_v11  ;;  %v979_v8 = vpack.c.bf16 %v947_v0, %v947_v0  ;;  %v933_v11 = vld [vmem:[#allocation2 + $0xc0] sm:$0xff] }
 0x251   : > { %v2251_v18 = vrot.slane %v2250_v14, 1  ;;  %v1648_v5 = vpop.permute.xlu2 %1647 }
 0x252   : > { %v1408_v23 = vpop.permute.xlu0 %1407 }
 0x253   : > { %v2252_v28 = vmax.f32 %v2250_v14, %v2251_v18  ;;  %v1630_v30 = vpop.permute.xlu1 %1629  ;;  %v1750_v61 = vsel %vm478_vm11, %v1306_v58, %v1408_v23  ;;  %v1282_v14 = vunpack.c.l.b16 %v962_v7 }
 0x254   : > { %v1828_v31 = vsel %vm1814_vm4, %v1791_v50, %v1630_v30  ;;  %v1793_v2 = vsel %vm1781_vm0, %v1750_v61, %v3293_v55  ;;  %v945_v50 = vld [vmem:[#allocation2 + $0x150] sm:$0xff] }
 0x255   : > { %v2352_v33 = vpack.c.bf16 %v2252_v28, %v2252_v28  ;;  %2023 = vmatmul.bf16.gmra.mxu0 %v1828_v31  ;;  %v946_v28 = vld [vmem:[#allocation2 + $0x158] sm:$0xff] }
 0x256   : > { %v978_v32 = vpack.c.bf16 %v946_v28, %v946_v28 }
 0x257   : > { %v2404_v44 = vunpack.c.l.b16 %v2352_v33  ;;  %v3324_v30 = vpop.f32.mrf.mxu1  ;;  %v932_v33 = vld [vmem:[#allocation2 + $0xb0] sm:$0xff] }
 0x258   : > { %v964_v45 = vpack.c.bf16 %v932_v33, %v932_v33  ;;  %v1298_v46 = vunpack.c.l.b16 %v978_v32 }
 0x259   : > { %v3307_v47 = vsel %vm2419_vm14, %v2404_v44, %v2403_v43  ;;  %v1524_v27 = vpop.permute.xlu2 %1523  ;;  %v977_v43 = vpack.c.bf16 %v945_v50, %v945_v50  ;;  %v931_v44 = vld [vmem:[#allocation2 + $0xa8] sm:$0xff] }
 0x25a   : > { %v1534_v51 = vpop.permute.xlu0 %1533  ;;  %v963_v38 = vpack.c.bf16 %v931_v44, %v931_v44 }
 0x25b   : > { %v1422_v53 = vpop.permute.xlu1 %1421 }
 0x25c   : > { %v1771_v54 = vsel %vm478_vm11, %v1313_v52, %v1422_v53  ;;  %v1284_v53 = vunpack.c.l.b16 %v964_v45 }
 0x25d   : > { %v1807_v57 = vsel %vm1781_vm0, %v1771_v54, %v1534_v51  ;;  %v1297_v51 = vunpack.c.l.b16 %v977_v43 }
 0x25e   : > { %v1852_v59 = vsel %vm1814_vm4, %v1807_v57, %v1646_v21  ;;  %v1281_v21 = vunpack.c.l.b16 %v961_v10 }
 0x25f   : > { %2063 = vmatmul.bf16.gmra.mxu3 %v1852_v59  ;;  %v1315_v54 = vpack.c.b16 %v1298_v46, %v1297_v51  ;;  %v3328_v57 = vpop.f32.mrf.mxu1  ;;  %v1283_v59 = vunpack.c.l.b16 %v963_v38 }
 0x260   : > { %v1307_v23 = vpack.c.b16 %v1282_v14, %v1281_v21  ;;  %v966_v14 = vpack.c.bf16 %v934_v4, %v934_v4 }
 0x261   : > { %v1650_v52 = vpop.permute.xlu2 %1649  ;;  %v1308_v61 = vpack.c.b16 %v1284_v53, %v1283_v59 }
 0x262   : > { %v1410_v15 = vpop.permute.xlu0 %1409  ;;  %v1286_v21 = vunpack.c.l.b16 %v966_v14 }
 0x263   : > { %v1632_v1 = vpop.permute.xlu1 %1631  ;;  %v1753_v29 = vsel %vm478_vm11, %v1307_v23, %v1410_v15  ;;  %v948_v15 = vld [vmem:[#allocation2 + $0x170] sm:$0xff] }
 0x264   : > { %v1831_v3 = vsel %vm1814_vm4, %v1793_v2, %v1632_v1  ;;  %v1795_v39 = vsel %vm1781_vm0, %v1753_v29, %v1522_v20  ;;  %v980_v2 = vpack.c.bf16 %v948_v15, %v948_v15 }
 0x265   : > { %2028 = vmatmul.bf16.gmra.mxu0 %v1831_v3 }
 0x267   : > { %v3336_v10 = vpop.f32.mrf.mxu1 }
 0x269   : > { %v1526_v3 = vpop.permute.xlu2 %1525 }
 0x26a   : > { %v1536_v16 = vpop.permute.xlu0 %1535 }
 0x26b   : > { %v1424_v18 = vpop.permute.xlu1 %1423 }
 0x26c   : > { %v1774_v22 = vsel %vm478_vm11, %v1314_v17, %v1424_v18  ;;  %v965_v17 = vpack.c.bf16 %v933_v11, %v933_v11  ;;  %v1299_v18 = vunpack.c.l.b16 %v979_v8 }
 0x26d   : > { %v1809_v55 = vsel %vm1781_vm0, %v1774_v22, %v1536_v16  ;;  %v1300_v16 = vunpack.c.l.b16 %v980_v2 }
 0x26e   : > { %v1855_v24 = vsel %vm1814_vm4, %v1809_v55, %v1648_v5 }
 0x26f   : > { %2068 = vmatmul.bf16.gmra.mxu3 %v1855_v24  ;;  %v1316_v55 = vpack.c.b16 %v1300_v16, %v1299_v18  ;;  %v1285_v24 = vunpack.c.l.b16 %v965_v17  ;;  %v3341_v32 = vpop.f32.mrf.mxu1 }
 0x271   : > { %v1652_v29 = vpop.permute.xlu2 %1651  ;;  %v1309_v50 = vpack.c.b16 %v1286_v21, %v1285_v24 }
 0x272   : > { %v1412_v31 = vpop.permute.xlu0 %1411 }
 0x273   : > { %v1634_v36 = vpop.permute.xlu1 %1633  ;;  %v1756_v63 = vsel %vm478_vm11, %v1308_v61, %v1412_v31 }
 0x274   : > { %v1834_v41 = vsel %vm1814_vm4, %v1795_v39, %v1634_v36  ;;  %v1797_v6 = vsel %vm1781_vm0, %v1756_v63, %v1524_v27 }
 0x275   : > { %2033 = vmatmul.bf16.gmra.mxu0 %v1834_v41 }
 0x277   : > { %v2138_v43 = vpop.f32.mrf.mxu1 }
 0x27a   : > { %v1538_v42 = vpop.permute.xlu0 %1537 }
 0x27b   : > { %v1426_v58 = vpop.permute.xlu1 %1425 }
 0x27c   : > { %v1777_v60 = vsel %vm478_vm11, %v1315_v54, %v1426_v58 }
 0x27d   : > { %v1811_v20 = vsel %vm1781_vm0, %v1777_v60, %v1538_v42 }
 0x27e   : > { %v1858_v12 = vsel %vm1814_vm4, %v1811_v20, %v1650_v52 }
 0x27f   : > { %2073 = vmatmul.bf16.gmra.mxu3 %v1858_v12  ;;  %v2140_v46 = vpop.f32.mrf.mxu1 }
 0x282   : > { %v1414_v1 = vpop.permute.xlu0 %1413 }
 0x283   : > { %v1636_v5 = vpop.permute.xlu1 %1635  ;;  %v1759_v33 = vsel %vm478_vm11, %v1309_v50, %v1414_v1 }
 0x284   : > { %v1837_v7 = vsel %vm1814_vm4, %v1797_v6, %v1636_v5  ;;  %v1799_v39 = vsel %vm1781_vm0, %v1759_v33, %v1526_v3 }
 0x285   : > { %2038 = vmatmul.bf16.gmra.mxu0 %v1837_v7 }
 0x287   : > { %v2143_v60 = vpop.f32.mrf.mxu1 }
 0x28a   : > { %v1540_v22 = vpop.permute.xlu0 %1539 }
 0x28b   : > { %v1428_v23 = vpop.permute.xlu1 %1427 }
 0x28c   : > { %v1780_v28 = vsel %vm478_vm11, %v1316_v55, %v1428_v23  ;;  %vm2421_vm11 = vcmask 1042434  }
 0x28d   : > { %v1813_v27 = vsel %vm1781_vm0, %v1780_v28, %v1540_v22 }
 0x28e   : > { %v1861_v31 = vsel %vm1814_vm4, %v1813_v27, %v1652_v29 }
 0x28f   : > { %2078 = vmatmul.bf16.gmra.mxu3 %v1861_v31  ;;  %v2145_v7 = vpop.f32.mrf.mxu1 }
 0x293   : > { %v1638_v36 = vpop.permute.xlu1 %1637 }
 0x294   : > { %v1840_v41 = vsel %vm1814_vm4, %v1799_v39, %v1638_v36 }
 0x295   : > { %2043 = vmatmul.bf16.gmra.mxu0 %v1840_v41 }
 0x297   : > { %v2148_v23 = vpop.f32.mrf.mxu1 }
 0x2a2   : > { %v2014_v44 = vpop.f32.mrf.mxu0  ;;  %v2049_v45 = vpop.f32.mrf.mxu3 }
 0x2a3   : > { %v2015_v38 = vadd.f32 %v3245_v26, %v2014_v44  ;;  %v2050_v51 = vadd.f32 %v3245_v26, %v2049_v45 }
 0x2a5   : > { %v2104_v52 = vadd.f32 %v3230_v40, %v2015_v38  ;;  %v2139_v53 = vadd.f32 %v2138_v43, %v2050_v51 }
 0x2a7   : > { %v2177_v20 = vmax.f32 %v2104_v52, 0.0  ;;  %v2191_v61 = vmax.f32 %v2139_v53, 0.0  ;;  %v3370_v53 = vpop.f32.mrf.mxu1 }
 0x2a9   : > { %v2211_v1 = vmul.f32 %v3263_v49, %v2177_v20  ;;  %v2225_v2 = vmul.f32 %v3263_v49, %v2191_v61 }
 0x2aa   : > { %v2016_v42 = vpop.f32.mrf.mxu0  ;;  %v2051_v54 = vpop.f32.mrf.mxu3 }
 0x2ab   : > { %v2017_v58 = vadd.f32 %v3245_v26, %v2016_v42  ;;  %v2052_v59 = vadd.f32 %v3245_v26, %v2051_v54 }
 0x2ad   : > { %v2106_v12 = vadd.f32 %v3238_v13, %v2017_v58  ;;  %v2141_v15 = vadd.f32 %v2140_v46, %v2052_v59 }
 0x2af   : > { %v2178_v63 = vmax.f32 %v2106_v12, 0.0  ;;  %v2192_v0 = vmax.f32 %v2141_v15, 0.0  ;;  %v3375_v12 = vpop.f32.mrf.mxu1 }
 0x2b1   : > { %v2212_v40 = vmul.f32 %v3268_v48, %v2178_v63  ;;  %v2226_v3 = vmul.f32 %v3268_v48, %v2192_v0 }
 0x2b3   : > { %v2253_v4 = vmax.f32 %v2211_v1, %v2212_v40  ;;  %v3356_v5 = vmax.f32 %v2225_v2, %v2226_v3  ;;  %v2813_v1 = vld [vmem:[%s3484_s5 + $0x38] sm:$0xff] }
 0x2b4   : > { %2490 = vmatpush.bf16.msra.mxu2 %v2813_v1 }
 0x2b5   : > { %v2254_v6 = vrot.slane %v2253_v4, 4 }
 0x2b7   : > { %v2255_v8 = vmax.f32 %v2253_v4, %v2254_v6 }
 0x2b9   : > { %v2256_v11 = vrot.slane %v2255_v8, 2 }
 0x2ba   : > { %v2019_v14 = vpop.f32.mrf.mxu0  ;;  %v2054_v13 = vpop.f32.mrf.mxu3 }
 0x2bb   : > { %v2257_v16 = vmax.f32 %v2255_v8, %v2256_v11  ;;  %v2020_v17 = vadd.f32 %v3245_v26, %v2019_v14  ;;  %v2055_v21 = vadd.f32 %v3245_v26, %v2054_v13 }
 0x2bd   : > { %v2258_v18 = vrot.slane %v2257_v16, 1  ;;  %v2109_v55 = vadd.f32 %v3250_v35, %v2020_v17  ;;  %v2144_v28 = vadd.f32 %v2143_v60, %v2055_v21 }
 0x2bf   : > { %v2259_v22 = vmax.f32 %v2257_v16, %v2258_v18  ;;  %v2179_v36 = vmax.f32 %v2109_v55, 0.0  ;;  %v2193_v41 = vmax.f32 %v2144_v28, 0.0  ;;  %v2155_v16 = vpop.f32.mrf.mxu1  ;;  %v2811_v28 = vld [vmem:[%s3484_s5 + $0x28] sm:$0xff] }
 0x2c1   : > { %v2353_v24 = vpack.c.bf16 %v2259_v22, %v2259_v22  ;;  %v2213_v46 = vmul.f32 %v3263_v49, %v2179_v36  ;;  %v2227_v38 = vmul.f32 %v3263_v49, %v2193_v41 }
 0x2c2   : > { %v2021_v29 = vpop.f32.mrf.mxu0  ;;  %v2056_v27 = vpop.f32.mrf.mxu3 }
 0x2c3   : > { %v2405_v50 = vunpack.c.l.b16 %v2353_v24  ;;  %v2022_v31 = vadd.f32 %v3245_v26, %v2021_v29  ;;  %v2057_v33 = vadd.f32 %v3245_v26, %v2056_v27 }
 0x2c5   : > { %v2422_v39 = vsel %vm2421_vm11, %v2405_v50, %v3307_v47  ;;  %v2111_v43 = vadd.f32 %v3270_v37, %v2022_v31  ;;  %v2146_v44 = vadd.f32 %v2145_v7, %v2057_v33 }
 0x2c7   : > { %v2180_v35 = vmax.f32 %v2111_v43, 0.0  ;;  %v2194_v45 = vmax.f32 %v2146_v44, 0.0  ;;  %v2158_v29 = vpop.f32.mrf.mxu1 }
 0x2c9   : > { %v2214_v51 = vmul.f32 %v3268_v48, %v2180_v35  ;;  %v2228_v52 = vmul.f32 %v3268_v48, %v2194_v45 }
 0x2cb   : > { %v2260_v42 = vmax.f32 %v2213_v46, %v2214_v51  ;;  %v3372_v54 = vmax.f32 %v2227_v38, %v2228_v52  ;;  %v2810_v46 = vld [vmem:[%s3484_s5 + $0x20] sm:$0xff] }
 0x2cd   : > { %v2261_v47 = vrot.slane %v2260_v42, 4 }
 0x2cf   : > { %v2262_v58 = vmax.f32 %v2260_v42, %v2261_v47  ;;  %v2160_v35 = vpop.f32.mrf.mxu1 }
 0x2d1   : > { %v2263_v59 = vrot.slane %v2262_v58, 2 }
 0x2d2   : > { %v2024_v37 = vpop.f32.mrf.mxu0  ;;  %v2059_v60 = vpop.f32.mrf.mxu3 }
 0x2d3   : > { %v2264_v20 = vmax.f32 %v2262_v58, %v2263_v59  ;;  %v2060_v61 = vadd.f32 %v3245_v26, %v2059_v60  ;;  %v2025_v63 = vadd.f32 %v3245_v26, %v2024_v37  ;;  %v2809_v37 = vld [vmem:[%s3484_s5 + $0x18] sm:$0xff] }
 0x2d5   : > { %v2265_v15 = vrot.slane %v2264_v20, 1  ;;  %v3378_v0 = vadd.f32 %v2148_v23, %v2060_v61  ;;  %v2114_v3 = vadd.f32 %v3276_v19, %v2025_v63  ;;  %v2812_v23 = vld [vmem:[%s3484_s5 + $0x30] sm:$0xff] }
 0x2d6   : > { %2491 = vmatpush.bf16.msra.mxu2 %v2812_v23 }
 0x2d7   : > { %v2266_v2 = vmax.f32 %v2264_v20, %v2265_v15  ;;  %v2181_v14 = vmax.f32 %v2114_v3, 0.0  ;;  %v2163_v42 = vpop.f32.mrf.mxu1 }
 0x2d9   : > { %v2354_v40 = vpack.c.bf16 %v2266_v2, %v2266_v2  ;;  %v2215_v18 = vmul.f32 %v3263_v49, %v2181_v14 }
 0x2da   : > { %v2026_v4 = vpop.f32.mrf.mxu0  ;;  %v2061_v6 = vpop.f32.mrf.mxu3  ;;  %2492 = vmatpush.bf16.msra.mxu2 %v2811_v28 }
 0x2db   : > { %v2406_v7 = vunpack.c.l.b16 %v2354_v40  ;;  %v2027_v8 = vadd.f32 %v3245_v26, %v2026_v4  ;;  %v2062_v59 = vadd.f32 %v3245_v26, %v2061_v6 }
 0x2dd   : > { %v2424_v11 = vsel %vm2423_vm1, %v2406_v7, %v2422_v39  ;;  %v2116_v13 = vadd.f32 %v3287_v34, %v2027_v8  ;;  %v2151_v1 = vadd.f32 %v3370_v53, %v2062_v59 }
 0x2de   : > { %2493 = vmatpush.bf16.msra.mxu2 %v2810_v46 }
 0x2df   : > { %v2182_v17 = vmax.f32 %v2116_v13, 0.0  ;;  %v2165_v63 = vpop.f32.mrf.mxu1 }
 0x2e1   : > { %v2216_v21 = vmul.f32 %v3268_v48, %v2182_v17 }
 0x2e2   : > { %v2029_v22 = vpop.f32.mrf.mxu0  ;;  %v2064_v55 = vpop.f32.mrf.mxu3  ;;  %2494 = vmatpush.bf16.msra.mxu2 %v2809_v37 }
 0x2e3   : > { %v2267_v19 = vmax.f32 %v2215_v18, %v2216_v21  ;;  %v2030_v20 = vadd.f32 %v3245_v26, %v2029_v22  ;;  %v2065_v40 = vadd.f32 %v3245_v26, %v2064_v55  ;;  %v2196_v18 = vmax.f32 %v2151_v1, 0.0 }
 0x2e4   : > { %v2195_v55 = vmax.f32 %v3378_v0, 0.0 }
 0x2e5   : > { %v2268_v24 = vrot.slane %v2267_v19, 4  ;;  %v2119_v8 = vadd.f32 %v3295_v62, %v2030_v20 }
 0x2e7   : > { %v2269_v34 = vmax.f32 %v2267_v19, %v2268_v24  ;;  %v2154_v19 = vadd.f32 %v3375_v12, %v2065_v40  ;;  %v2303_v40 = vrot.slane %v3356_v5, 4 }
 0x2e9   : > { %v2270_v27 = vrot.slane %v2269_v34, 2  ;;  %v2197_v0 = vmax.f32 %v2154_v19, 0.0 }
 0x2ea   : > { %v2031_v50 = vpop.f32.mrf.mxu0  ;;  %v2066_v31 = vpop.f32.mrf.mxu3 }
 0x2eb   : > { %v2271_v33 = vmax.f32 %v2269_v34, %v2270_v27  ;;  %v2032_v60 = vadd.f32 %v3245_v26, %v2031_v50  ;;  %v2067_v61 = vadd.f32 %v3245_v26, %v2066_v31  ;;  %v2183_v34 = vmax.f32 %v2119_v8, 0.0 }
 0x2ec   : > { %v2231_v59 = vmul.f32 %v3263_v49, %v2197_v0 }
 0x2ed   : > { %v2272_v36 = vrot.slane %v2271_v33, 1  ;;  %v2121_v3 = vadd.f32 %v3301_v25, %v2032_v60 }
 0x2ef   : > { %v2273_v39 = vmax.f32 %v2271_v33, %v2272_v36  ;;  %v2184_v23 = vmax.f32 %v2121_v3, 0.0  ;;  %v2230_v33 = vmul.f32 %v3268_v48, %v2196_v18 }
 0x2f1   : > { %v2355_v41 = vpack.c.bf16 %v2273_v39, %v2273_v39  ;;  %v2218_v12 = vmul.f32 %v3268_v48, %v2184_v23 }
 0x2f2   : > { %v2034_v43 = vpop.f32.mrf.mxu0  ;;  %v2069_v44 = vpop.f32.mrf.mxu3 }
 0x2f3   : > { %v2407_v45 = vunpack.c.l.b16 %v2355_v41  ;;  %v2035_v4 = vadd.f32 %v3245_v26, %v2034_v43  ;;  %v2070_v6 = vadd.f32 %v3245_v26, %v2069_v44 }
 0x2f5   : > { %v3399_v38 = vsel %vm2425_vm2, %v2407_v45, %v2424_v11  ;;  %v2156_v11 = vadd.f32 %v2155_v16, %v2067_v61  ;;  %v2124_v62 = vadd.f32 %v3310_v56, %v2035_v4  ;;  %v2159_v16 = vadd.f32 %v2158_v29, %v2070_v6  ;;  %v2168_v56 = vpop.f32.mrf.mxu1 }
 0x2f6   : > { %v2229_v29 = vmul.f32 %v3263_v49, %v2195_v55 }
 0x2f7   : > { %v2198_v27 = vmax.f32 %v2156_v11, 0.0  ;;  %v2185_v41 = vmax.f32 %v2124_v62, 0.0  ;;  %v2807_v11 = vld [vmem:[%s3484_s5 + $0x8] sm:$0xff] }
 0x2f9   : > { %v2219_v60 = vmul.f32 %v3263_v49, %v2185_v41 }
 0x2fa   : > { %v2036_v51 = vpop.f32.mrf.mxu0  ;;  %v2071_v52 = vpop.f32.mrf.mxu3 }
 0x2fb   : > { %v2037_v15 = vadd.f32 %v3245_v26, %v2036_v51  ;;  %v2072_v2 = vadd.f32 %v3245_v26, %v2071_v52 }
 0x2fd   : > { %v2126_v14 = vadd.f32 %v3318_v9, %v2037_v15  ;;  %v2161_v21 = vadd.f32 %v2160_v35, %v2072_v2  ;;  %v2232_v35 = vmul.f32 %v3268_v48, %v2198_v27  ;;  %v2808_v2 = vld [vmem:[%s3484_s5 + $0x10] sm:$0xff] }
 0x2fe   : > { %2495 = vmatpush.bf16.msra.mxu2 %v2808_v2 }
 0x2ff   : > { %v2186_v50 = vmax.f32 %v2126_v14, 0.0  ;;  %v2200_v36 = vmax.f32 %v2161_v21, 0.0  ;;  %v2323_v3 = vmax.f32 %v2231_v59, %v2232_v35  ;;  %v2310_v14 = vrot.slane %v3372_v54, 4 }
 0x301   : > { %v2220_v45 = vmul.f32 %v3268_v48, %v2186_v50 }
 0x302   : > { %v2039_v47 = vpop.f32.mrf.mxu0  ;;  %v2074_v58 = vpop.f32.mrf.mxu3  ;;  %2496 = vmatpush.bf16.msra.mxu2 %v2807_v11 }
 0x303   : > { %v2040_v7 = vadd.f32 %v3245_v26, %v2039_v47  ;;  %v2075_v13 = vadd.f32 %v3245_v26, %v2074_v58  ;;  %v2234_v47 = vmul.f32 %v3268_v48, %v2200_v36  ;;  %v2281_v4 = vmax.f32 %v2219_v60, %v2220_v45 }
 0x305   : > { %v2129_v9 = vadd.f32 %v3324_v30, %v2040_v7  ;;  %v2164_v31 = vadd.f32 %v2163_v42, %v2075_v13  ;;  %v2199_v30 = vmax.f32 %v2159_v16, 0.0  ;;  %v2316_v42 = vmax.f32 %v2229_v29, %v2230_v33 }
 0x306   : > { %v2282_v55 = vrot.slane %v2281_v4, 4 }
 0x307   : > { %v2187_v44 = vmax.f32 %v2129_v9, 0.0  ;;  %v2201_v46 = vmax.f32 %v2164_v31, 0.0  ;;  %v2233_v61 = vmul.f32 %v3263_v49, %v2199_v30  ;;  %v2317_v13 = vrot.slane %v2316_v42, 4 }
 0x308   : > { %v2283_v41 = vmax.f32 %v2281_v4, %v2282_v55 }
 0x309   : > { %v2221_v15 = vmul.f32 %v3263_v49, %v2187_v44  ;;  %v2235_v6 = vmul.f32 %v3263_v49, %v2201_v46  ;;  %v2330_v7 = vmax.f32 %v2233_v61, %v2234_v47  ;;  %v2318_v27 = vmax.f32 %v2316_v42, %v2317_v13 }
 0x30a   : > { %v2041_v53 = vpop.f32.mrf.mxu0  ;;  %v2076_v17 = vpop.f32.mrf.mxu3  ;;  %v2284_v42 = vrot.slane %v2283_v41, 2 }
 0x30b   : > { %v2042_v22 = vadd.f32 %v3245_v26, %v2041_v53  ;;  %v2077_v25 = vadd.f32 %v3245_v26, %v2076_v17  ;;  %v2331_v62 = vrot.slane %v2330_v7, 4  ;;  %v2319_v44 = vrot.slane %v2318_v27, 2 }
 0x30d   : > { %v2131_v24 = vadd.f32 %v3328_v57, %v2042_v22  ;;  %v2166_v28 = vadd.f32 %v2165_v63, %v2077_v25  ;;  %v2217_v57 = vmul.f32 %v3263_v49, %v2183_v34  ;;  %v2304_v22 = vmax.f32 %v3356_v5, %v2303_v40  ;;  %v2170_v34 = vpop.f32.mrf.mxu1 }
 0x30e   : > { %v2324_v25 = vrot.slane %v2323_v3, 4  ;;  %v2320_v61 = vmax.f32 %v2318_v27, %v2319_v44 }
 0x30f   : > { %v2188_v39 = vmax.f32 %v2131_v24, 0.0  ;;  %v2202_v43 = vmax.f32 %v2166_v28, 0.0  ;;  %v2274_v37 = vmax.f32 %v2217_v57, %v2218_v12  ;;  %v2806_v28 = vld [vmem:[%s3484_s5] sm:$0xff]  ;;  %v2305_v0 = vrot.slane %v2304_v22, 2 }
 0x310   : > { %v2325_v12 = vmax.f32 %v2323_v3, %v2324_v25  ;;  %2497 = vmatpush.bf16.msra.mxu2 %v2806_v28  ;;  %v2321_v11 = vrot.slane %v2320_v61, 1 }
 0x311   : > { %v2222_v58 = vmul.f32 %v3268_v48, %v2188_v39  ;;  %v2236_v20 = vmul.f32 %v3268_v48, %v2202_v43  ;;  %v2275_v53 = vrot.slane %v2274_v37, 4 }
 0x312   : > { %v2044_v51 = vpop.f32.mrf.mxu0  ;;  %v2079_v52 = vpop.f32.mrf.mxu3 }
 0x313   : > { %v2045_v63 = vadd.f32 %v3245_v26, %v2044_v51  ;;  %v2080_v1 = vadd.f32 %v3245_v26, %v2079_v52  ;;  %v2288_v8 = vmax.f32 %v2221_v15, %v2222_v58  ;;  %v2337_v17 = vmax.f32 %v2235_v6, %v2236_v20 }
 0x314   : > { %v2276_v5 = vmax.f32 %v2274_v37, %v2275_v53  ;;  %v2306_v51 = vmax.f32 %v2304_v22, %v2305_v0  ;;  %v2326_v52 = vrot.slane %v2325_v12, 2 }
 0x315   : > { %v2134_v18 = vadd.f32 %v3336_v10, %v2045_v63  ;;  %v2169_v21 = vadd.f32 %v2168_v56, %v2080_v1  ;;  %v2289_v16 = vrot.slane %v2288_v8, 4  ;;  %v2311_v10 = vmax.f32 %v3372_v54, %v2310_v14 }
 0x316   : > { %v2338_v50 = vrot.slane %v2337_v17, 4  ;;  %v2277_v57 = vrot.slane %v2276_v5, 2  ;;  %v2307_v2 = vrot.slane %v2306_v51, 1  ;;  %v2327_v40 = vmax.f32 %v2325_v12, %v2326_v52 }
 0x317   : > { %v2189_v31 = vmax.f32 %v2134_v18, 0.0  ;;  %v2203_v33 = vmax.f32 %v2169_v21, 0.0  ;;  %v2290_v43 = vmax.f32 %v2288_v8, %v2289_v16  ;;  %v2312_v30 = vrot.slane %v2311_v10, 2 }
 0x318   : > { %v2339_v54 = vmax.f32 %v2337_v17, %v2338_v50  ;;  %v2278_v15 = vmax.f32 %v2276_v5, %v2277_v57  ;;  %v2308_v17 = vmax.f32 %v2306_v51, %v2307_v2  ;;  %v2328_v18 = vrot.slane %v2327_v40, 1 }
 0x319   : > { %v2223_v35 = vmul.f32 %v3263_v49, %v2189_v31  ;;  %v2237_v45 = vmul.f32 %v3263_v49, %v2203_v33  ;;  %v2291_v58 = vrot.slane %v2290_v43, 2  ;;  %v2313_v60 = vmax.f32 %v2311_v10, %v2312_v30 }
 0x31a   : > { %v2046_v19 = vpop.f32.mrf.mxu0  ;;  %v2081_v23 = vpop.f32.mrf.mxu3  ;;  %v2340_v20 = vrot.slane %v2339_v54, 2  ;;  %v2285_v49 = vmax.f32 %v2283_v41, %v2284_v42  ;;  %v2279_v14 = vrot.slane %v2278_v15, 1  ;;  %v2322_v16 = vmax.f32 %v2320_v61, %v2321_v11 }
 0x31b   : > { %v2047_v9 = vadd.f32 %v3245_v26, %v2046_v19  ;;  %v2082_v24 = vadd.f32 %v3245_v26, %v2081_v23  ;;  %v2332_v26 = vmax.f32 %v2330_v7, %v2331_v62  ;;  %v2292_v4 = vmax.f32 %v2290_v43, %v2291_v58 }
 0x31c   : > { %v2314_v7 = vrot.slane %v2313_v60, 1  ;;  %v2341_v8 = vmax.f32 %v2339_v54, %v2340_v20  ;;  %v2286_v21 = vrot.slane %v2285_v49, 1  ;;  %v2360_v27 = vpack.c.bf16 %v2308_v17, %v2308_v17 }
 0x31d   : > { %v2136_v36 = vadd.f32 %v3341_v32, %v2047_v9  ;;  %v2171_v39 = vadd.f32 %v2170_v34, %v2082_v24  ;;  %v2333_v47 = vrot.slane %v2332_v26, 2  ;;  %v2293_v25 = vrot.slane %v2292_v4, 1 }
 0x31e   : > { %v2315_v23 = vmax.f32 %v2313_v60, %v2314_v7  ;;  %v2342_v62 = vrot.slane %v2341_v8, 1  ;;  %v2280_v9 = vmax.f32 %v2278_v15, %v2279_v14  ;;  %v2329_v34 = vmax.f32 %v2327_v40, %v2328_v18 }
 0x31f   : > { %v2190_v56 = vmax.f32 %v2136_v36, 0.0  ;;  %v2204_v29 = vmax.f32 %v2171_v39, 0.0  ;;  %v2334_v3 = vmax.f32 %v2332_v26, %v2333_v47  ;;  %v2287_v10 = vmax.f32 %v2285_v49, %v2286_v21 }
 0x320   : > { %v2294_v50 = vmax.f32 %v2292_v4, %v2293_v25  ;;  %v2361_v33 = vpack.c.bf16 %v2315_v23, %v2315_v23  ;;  %v2343_v36 = vmax.f32 %v2341_v8, %v2342_v62  ;;  %v2362_v39 = vpack.c.bf16 %v2322_v16, %v2322_v16 }
 0x321   : > { %v2224_v46 = vmul.f32 %v3268_v48, %v2190_v56  ;;  %v2238_v32 = vmul.f32 %v3268_v48, %v2204_v29  ;;  %v2335_v22 = vrot.slane %v2334_v3, 1  ;;  %v2356_v0 = vpack.c.bf16 %v2280_v9, %v2280_v9 }
 0x322   : > { %v2363_v26 = vpack.c.bf16 %v2329_v34, %v2329_v34  ;;  %v2357_v43 = vpack.c.bf16 %v2287_v10, %v2287_v10  ;;  %v2412_v56 = vunpack.c.l.b16 %v2360_v27  ;;  %v2358_v30 = vpack.c.bf16 %v2294_v50, %v2294_v50 }
 0x323   : > { %v2295_v59 = vmax.f32 %v2223_v35, %v2224_v46  ;;  %v2344_v37 = vmax.f32 %v2237_v45, %v2238_v32  ;;  %v2336_v5 = vmax.f32 %v2334_v3, %v2335_v22  ;;  %v2413_v57 = vunpack.c.l.b16 %v2361_v33  ;;  %v2839_v3 = vld [vmem:[%s3485_s6] ss:$0 sm:$0xff] }
 0x324   : > { %v2365_v54 = vpack.c.bf16 %v2343_v36, %v2343_v36  ;;  %v2414_v35 = vunpack.c.l.b16 %v2362_v39  ;;  %v2408_v45 = vunpack.c.l.b16 %v2356_v0  ;;  %v2415_v51 = vunpack.c.l.b16 %v2363_v26 }
 0x325   : > { %v2296_v63 = vrot.slane %v2295_v59, 4  ;;  %v2345_v1 = vrot.slane %v2344_v37, 4  ;;  %v2364_v29 = vpack.c.bf16 %v2336_v5, %v2336_v5  ;;  %v2409_v52 = vunpack.c.l.b16 %v2357_v43 }
 0x326   : > { %v2410_v58 = vunpack.c.l.b16 %v2358_v30  ;;  %v2428_v61 = vsel %vm2427_vm5, %v2408_v45, %v3399_v38 }
 0x327   : > { %v2297_v6 = vmax.f32 %v2295_v59, %v2296_v63  ;;  %v2346_v48 = vmax.f32 %v2344_v37, %v2345_v1  ;;  %v2416_v47 = vunpack.c.l.b16 %v2364_v29  ;;  %v2417_v37 = vunpack.c.l.b16 %v2365_v54 }
 0x328   : > { %v2430_v63 = vsel %vm2429_vm6, %v2409_v52, %v2428_v61 }
 0x329   : > { %v2298_v13 = vrot.slane %v2297_v6, 2  ;;  %v2347_v53 = vrot.slane %v2346_v48, 2  ;;  %v2432_v2 = vsel %vm2431_vm7, %v2410_v58, %v2430_v63 }
 0x32b   : > { %v2299_v55 = vmax.f32 %v2297_v6, %v2298_v13  ;;  %v2348_v19 = vmax.f32 %v2346_v48, %v2347_v53 }
 0x32d   : > { %v2300_v24 = vrot.slane %v2299_v55, 1  ;;  %v2349_v28 = vrot.slane %v2348_v19, 1 }
 0x32f   : > { %v2301_v31 = vmax.f32 %v2299_v55, %v2300_v24  ;;  %v2350_v41 = vmax.f32 %v2348_v19, %v2349_v28 }
 0x331   : > { %v2359_v12 = vpack.c.bf16 %v2301_v31, %v2301_v31  ;;  %v2366_v32 = vpack.c.bf16 %v2350_v41, %v2350_v41 }
 0x333   : > { %v2411_v44 = vunpack.c.l.b16 %v2359_v12  ;;  %v2418_v20 = vunpack.c.l.b16 %v2366_v32 }
 0x335   : > { %v2433_v46 = vsel %vm2419_vm14, %v2412_v56, %v2411_v44 }
 0x336   : > { %v2434_v42 = vsel %vm2421_vm11, %v2413_v57, %v2433_v46 }
 0x337   : > { %v2435_v59 = vsel %vm2423_vm1, %v2414_v35, %v2434_v42 }
 0x338   : > { %v2436_v60 = vsel %vm2425_vm2, %v2415_v51, %v2435_v59 }
 0x339   : > { %v2437_v15 = vsel %vm2427_vm5, %v2416_v47, %v2436_v60 }
 0x33a   : > { %v2438_v1 = vsel %vm2429_vm6, %v2417_v37, %v2437_v15 }
 0x33b   : > { %v2439_v40 = vsel %vm2431_vm7, %v2418_v20, %v2438_v1 }
 0x33c   : > { %v2440_v49 = vpack.c.b16 %v2439_v40, %v2432_v2 }
 0x33e   : > { %2498 = vmatmul.bf16.vlgmr.msra.gmra.mxu2 %v2440_v49 }
 0x3c1   : > { %v2499_v38 = vpop.f32.mrf.mxu2 }
 0x3c2   : > { %v2500_v4 = vadd.f32 %v2839_v3, %v2499_v38 }
 0x3c4   : > { %2504 = vst [vmem:[%s280_s12] sm:$0xff] %v2500_v4 }
 0x3c9   : > { %v2501_v6 = vpop.f32.mrf.mxu2 }
 0x3ca   : > { %v2502_v48 = vadd.f32 %v2839_v3, %v2501_v6 }
 0x3cc   : > { %2505 = vst [vmem:[%s280_s12 + $0x8] sm:$0xff] %v2502_v48 }
 0x3cd PF: > { %s17_s24 = sadd.s32 1, %s2846_s24  }
 0x3ce   : > { %p14_p5 = scmp.ge.s32.totalorder %s17_s24, 4  }
 0x3d0   :  { %16 = sbr.rel (!%p14_p5) target bundleno = 1 (0x1), region = 81 }

</bundles_post_ra>
